<compile_context>
chip_gen: v7x
topology: tpu7x:2x2x1
jax: 0.10.0
libtpu: 0.0.40
codegen_flags: <defaults>
</compile_context>

<pallas_src>
from functools import partial

import jax
import jax.numpy as jnp
import numpy as np
from jax.experimental import pallas as pl
from jax.experimental.pallas import tpu as pltpu


def _round_up(a, b):
    return (a + b - 1) // b * b


# --------------------------------------------------------------------------
# Kernel: per-edge force computation, tiled over edges (lane-major geometry).
# --------------------------------------------------------------------------
def force_edge_kernel(xr_ref, xc_ref, hr_ref, hc_ref,
                      w1_hr_ref, w1_hc_ref, w1_f_ref,
                      b1_ref, g_ref, beta_ref, w2t_ref, out_ref):
    f32 = jnp.float32
    xr = xr_ref[...]                                  # [3, TE] f32 (x[row]^T)
    xc = xc_ref[...]                                  # [3, TE] f32 (x[col]^T)

    xr_c = (xr[0:1, :], xr[1:2, :], xr[2:3, :])       # 3 x [1, TE] lane-dense
    xc_c = (xc[0:1, :], xc[1:2, :], xc[2:3, :])

    def cross(a, b):
        return (a[1] * b[2] - a[2] * b[1],
                a[2] * b[0] - a[0] * b[2],
                a[0] * b[1] - a[1] * b[0])

    def dot3(a, b):
        return a[0] * b[0] + a[1] * b[1] + a[2] * b[2]

    # ---- localize(): local frame F_ij = [x_diff | x_cross | x_vert] ----
    x_diff = tuple(a - b for a, b in zip(xr_c, xc_c))
    x_cross = cross(xr_c, xc_c)
    inv_dn = jax.lax.rsqrt(dot3(x_diff, x_diff) + 3e-30)      # [1, TE]
    x_diff = tuple(c * inv_dn for c in x_diff)
    inv_cn = jax.lax.rsqrt(dot3(x_cross, x_cross) + 3e-30)
    x_cross = tuple(c * inv_cn for c in x_cross)
    x_vert = cross(x_diff, x_cross)

    # ---- frame_i = x[row]^T F_ij, frame_j = x[col]^T F_ij  ([1,TE] each) ----
    fi = (dot3(xr_c, x_diff), dot3(xr_c, x_cross), dot3(xr_c, x_vert))
    fj = (dot3(xc_c, x_diff), dot3(xc_c, x_cross), dot3(xc_c, x_vert))

    zero = jnp.zeros_like(fi[0])
    frames = jnp.concatenate(
        [fi[0], fi[1], fi[2], fj[0], fj[1], fj[2], zero, zero], axis=0)  # [8,TE]

    # ---- force_mlp: Linear -> SiLU -> LayerNorm -> Linear(no bias) ----
    # Split-weight form of [hr | hc | frame_i | frame_j] @ W1 + b1
    h1 = jnp.dot(hr_ref[...], w1_hr_ref[...], preferred_element_type=f32)
    h1 = h1 + jnp.dot(hc_ref[...], w1_hc_ref[...], preferred_element_type=f32)
    # frame contribution on the MXU: contract the 8-row sublane dim (TN dot).
    h1 = h1 + jax.lax.dot_general(
        frames, w1_f_ref[...],
        dimension_numbers=(((0,), (0,)), ((), ())),
        preferred_element_type=f32)                           # [TE, H]
    h1 = h1 + b1_ref[...]

    h1 = h1 * jax.nn.sigmoid(h1)                              # SiLU

    # One-pass LayerNorm statistics.
    inv_h = 1.0 / h1.shape[-1]
    s1 = jnp.sum(h1, axis=-1, keepdims=True)
    s2 = jnp.sum(h1 * h1, axis=-1, keepdims=True)
    mu = s1 * inv_h
    var = jnp.maximum(s2 * inv_h - mu * mu, 0.0)
    h1 = (h1 - mu) * jax.lax.rsqrt(var + 1e-5)
    h1 = h1 * g_ref[...] + beta_ref[...]

    # Final Linear computed transposed: [3, TE] = w2^T [3,H] . h1^T (NT dot).
    inv_t = jax.lax.dot_general(
        w2t_ref[...], h1,
        dimension_numbers=(((1,), (1,)), ((), ())),
        preferred_element_type=f32)                           # [3, TE]
    f0, f1, f2 = inv_t[0:1, :], inv_t[1:2, :], inv_t[2:3, :]

    # ---- equiv_force = sum_k inv_force[k] * F_ij[:, k], clamped ----
    eq = jnp.concatenate(
        [f0 * x_diff[d] + f1 * x_cross[d] + f2 * x_vert[d] for d in range(3)],
        axis=0)                                               # [3, TE]
    out_ref[...] = jnp.clip(eq, -1000.0, 1000.0).astype(out_ref.dtype)


# --------------------------------------------------------------------------
# Parameters (shapes match force_block.__init__)
# --------------------------------------------------------------------------
def init_force_block_params(key, hidden_dim, out_force_dim=3):
    k1, k2, k3 = jax.random.split(key, 3)
    in_dim = hidden_dim * 2 + 6
    bound1 = 1.0 / jnp.sqrt(jnp.float32(in_dim))
    w1 = jax.random.uniform(k1, (in_dim, hidden_dim), jnp.float32, -bound1, bound1)
    b1 = jax.random.uniform(k2, (1, hidden_dim), jnp.float32, -bound1, bound1)
    gamma = jnp.ones((1, hidden_dim), jnp.float32)
    beta = jnp.zeros((1, hidden_dim), jnp.float32)
    bound2 = 0.001 * jnp.sqrt(6.0 / (hidden_dim + out_force_dim))
    w2 = jax.random.uniform(k3, (hidden_dim, out_force_dim), jnp.float32,
                            -bound2, bound2)
    return {"w1": w1, "b1": b1, "gamma": gamma, "beta": beta, "w2": w2}


# --------------------------------------------------------------------------
# Wrapper: gathers, padding, pallas_call, segment-mean scatter.
# --------------------------------------------------------------------------
def force_block_forward(x, node_energy_hidden, edge_index, params, *,
                        edge_tile=1024):
    """x: [N,3] f32, node_energy_hidden: [N,H] f32, edge_index: [2,E] int32."""
    row = edge_index[0].astype(jnp.int32)
    col = edge_index[1].astype(jnp.int32)
    N = x.shape[0]
    H = node_energy_hidden.shape[1]
    E = row.shape[0]

    # Per-edge gathers (XLA glue).  hr/hc stream in bf16 (halves HBM traffic);
    # MXU accumulation in the kernel is f32.
    xr, xc = x[row], x[col]
    hf = node_energy_hidden.astype(jnp.bfloat16)
    hr, hc = hf[row], hf[col]

    # Edge tiling: TE multiple of 128 (lane-dense layout); pad E up to a
    # multiple of TE.  Padded rows use distinct unit vectors so the geometry
    # of padded lanes stays finite; they are sliced away before the scatter.
    TE = min(_round_up(max(edge_tile, 128), 128),
             _round_up(max(E, 128), 128))
    E_pad = _round_up(E, TE)
    pad = E_pad - E
    if pad:
        pad_r = jnp.broadcast_to(jnp.array([1.0, 0.0, 0.0], xr.dtype), (pad, 3))
        pad_c = jnp.broadcast_to(jnp.array([0.0, 1.0, 0.0], xc.dtype), (pad, 3))
        xr = jnp.concatenate([xr, pad_r], axis=0)
        xc = jnp.concatenate([xc, pad_c], axis=0)
        hr = jnp.pad(hr, ((0, pad), (0, 0)))
        hc = jnp.pad(hc, ((0, pad), (0, 0)))

    xr_t = xr.T.astype(jnp.float32)                 # [3, E_pad] lane-major
    xc_t = xc.T.astype(jnp.float32)

    # Split W1 so the kernel avoids any lane concatenation of the features.
    w1 = params["w1"]
    w1_hr = w1[:H].astype(jnp.bfloat16)             # [H, H]
    w1_hc = w1[H:2 * H].astype(jnp.bfloat16)        # [H, H]
    w1_f = jnp.concatenate([w1[2 * H:2 * H + 6],
                            jnp.zeros((2, H), w1.dtype)], axis=0)  # [8, H]
    w1_f = w1_f.astype(jnp.float32)
    w2t = params["w2"].T.astype(jnp.float32)        # [3, H]
    b1 = params["b1"].astype(jnp.float32)
    gamma = params["gamma"].astype(jnp.float32)
    beta = params["beta"].astype(jnp.float32)

    lane_spec3 = pl.BlockSpec((3, TE), lambda i: (0, i))
    edge_specH = pl.BlockSpec((TE, H), lambda i: (i, 0))

    def full_spec(shape):
        return pl.BlockSpec(shape, lambda i: (0, 0))

    equiv_t = pl.pallas_call(
        force_edge_kernel,
        out_shape=jax.ShapeDtypeStruct((3, E_pad), jnp.float32),
        grid_spec=pltpu.PrefetchScalarGridSpec(
            num_scalar_prefetch=0,
            grid=(E_pad // TE,),
            in_specs=[lane_spec3, lane_spec3, edge_specH, edge_specH,
                      full_spec((H, H)), full_spec((H, H)),
                      full_spec((8, H)),
                      full_spec((1, H)), full_spec((1, H)), full_spec((1, H)),
                      full_spec((3, H))],
            out_specs=lane_spec3,
        ),
        compiler_params=pltpu.CompilerParams(
            dimension_semantics=("parallel",),
            vmem_limit_bytes=64 * 1024 * 1024,
        ),
    )(xr_t, xc_t, hr, hc, w1_hr, w1_hc, w1_f, b1, gamma, beta, w2t)

    # unsorted_segment_sum(..., 'mean') as an XLA scatter-add (avoids the
    # O(E*N) one-hot in VMEM).
    equiv = equiv_t[:, :E].T                        # [E, 3]
    seg_sum = jnp.zeros((N, 3), jnp.float32).at[row].add(equiv)
    counts = jnp.zeros((N,), jnp.float32).at[row].add(1.0)
    counts = jnp.where(counts == 0.0, 1.0, counts)
    return seg_sum / counts[:, None]


# --------------------------------------------------------------------------
# Pure-JAX reference (mirrors the PyTorch module) for a sanity check.
# --------------------------------------------------------------------------
def force_block_ref(x, node_energy_hidden, edge_index, params):
    hi_p = jax.lax.Precision.HIGHEST
    row, col = edge_index[0], edge_index[1]
    xr, xc = x[row], x[col]
    hr, hc = node_energy_hidden[row], node_energy_hidden[col]
    x_diff = xr - xc
    x_cross = jnp.cross(xr, xc)
    dn = jnp.sqrt(jnp.sum(x_diff ** 2 + 1e-30, axis=1, keepdims=True))
    x_diff = x_diff / dn
    cn = jnp.sqrt(jnp.sum(x_cross ** 2 + 1e-30, axis=1, keepdims=True))
    x_cross = x_cross / cn
    x_vert = jnp.cross(x_diff, x_cross)
    F = jnp.stack([x_diff, x_cross, x_vert], axis=-1)        # [E, 3, 3]
    frame_i = jnp.einsum("ed,edk->ek", xr, F, precision=hi_p)
    frame_j = jnp.einsum("ed,edk->ek", xc, F, precision=hi_p)
    feats = jnp.concatenate([hr, hc, frame_i, frame_j], axis=-1)
    h1 = jnp.dot(feats, params["w1"], precision=hi_p) + params["b1"]
    h1 = h1 * jax.nn.sigmoid(h1)
    mu = jnp.mean(h1, axis=-1, keepdims=True)
    var = jnp.mean((h1 - mu) ** 2, axis=-1, keepdims=True)
    h1 = (h1 - mu) / jnp.sqrt(var + 1e-5) * params["gamma"] + params["beta"]
    inv_force = jnp.dot(h1, params["w2"], precision=hi_p)
    equiv = jnp.einsum("ek,edk->ed", inv_force, F, precision=hi_p)
    equiv = jnp.clip(equiv, -1000.0, 1000.0)
    N = x.shape[0]
    seg_sum = jnp.zeros((N, 3), jnp.float32).at[row].add(equiv)
    counts = jnp.zeros((N,), jnp.float32).at[row].add(1.0)
    counts = jnp.where(counts == 0.0, 1.0, counts)
    return seg_sum / counts[:, None]


if __name__ == "__main__":
    N, H, E = 8, 32, 16

    key = jax.random.PRNGKey(0)
    kx, kh, kp = jax.random.split(key, 3)

    x = jax.random.normal(kx, (N, 3), jnp.float32)
    node_energy_hidden = jax.random.normal(kh, (N, H), jnp.float32)

    # deterministic edge list: each node gets 2 outgoing edges (row != col)
    row = jnp.repeat(jnp.arange(N, dtype=jnp.int32), 2)            # [E]
    col = (row + jnp.tile(jnp.array([1, 3], jnp.int32), N)) % N    # [E]
    edge_index = jnp.stack([row, col], axis=0)                     # [2, E]

    params = init_force_block_params(kp, H)

    node_force = force_block_forward(x, node_energy_hidden, edge_index, params)
    jax.block_until_ready(node_force)
    assert node_force.shape == (N, 3)
    assert bool(jnp.all(jnp.isfinite(node_force)))

    # Tolerance reflects the bf16-operand MXU matmuls (f32 accumulation).
    ref = force_block_ref(x, node_energy_hidden, edge_index, params)
    np.testing.assert_allclose(np.asarray(node_force), np.asarray(ref),
                               rtol=2e-2, atol=2e-4)
    print("KERNEL_OK")
</pallas_src>

<mosaic_0001>
module attributes {stable_mosaic.version = 11 : i64} {
  func.func @force_edge_kernel(%arg0: i32, %arg1: memref<3x128xf32, #tpu.memory_space<vmem>>, %arg2: memref<3x128xf32, #tpu.memory_space<vmem>>, %arg3: memref<128x32xbf16, #tpu.memory_space<vmem>>, %arg4: memref<128x32xbf16, #tpu.memory_space<vmem>>, %arg5: memref<32x32xbf16, #tpu.memory_space<vmem>>, %arg6: memref<32x32xbf16, #tpu.memory_space<vmem>>, %arg7: memref<8x32xf32, #tpu.memory_space<vmem>>, %arg8: memref<1x32xf32, #tpu.memory_space<vmem>>, %arg9: memref<1x32xf32, #tpu.memory_space<vmem>>, %arg10: memref<1x32xf32, #tpu.memory_space<vmem>>, %arg11: memref<3x32xf32, #tpu.memory_space<vmem>>, %arg12: memref<3x128xf32, #tpu.memory_space<vmem>>) attributes {dimension_semantics = [#tpu.dimension_semantics<parallel>], iteration_bounds = array<i64: 1>, scalar_prefetch = 0 : i64, scratch_operands = 0 : i64, tpu.core_type = #tpu.core_type<tc>, window_params = [{transform_indices = @transform_0, window_bounds = array<i64: 3, 128>}, {transform_indices = @transform_1, window_bounds = array<i64: 3, 128>}, {transform_indices = @transform_2, window_bounds = array<i64: 128, 32>}, {transform_indices = @transform_3, window_bounds = array<i64: 128, 32>}, {pipeline_mode = #tpu.pipeline_mode<synchronous>, transform_indices = @transform_4, window_bounds = array<i64: 32, 32>}, {pipeline_mode = #tpu.pipeline_mode<synchronous>, transform_indices = @transform_5, window_bounds = array<i64: 32, 32>}, {pipeline_mode = #tpu.pipeline_mode<synchronous>, transform_indices = @transform_6, window_bounds = array<i64: 8, 32>}, {pipeline_mode = #tpu.pipeline_mode<synchronous>, transform_indices = @transform_7, window_bounds = array<i64: 1, 32>}, {pipeline_mode = #tpu.pipeline_mode<synchronous>, transform_indices = @transform_8, window_bounds = array<i64: 1, 32>}, {pipeline_mode = #tpu.pipeline_mode<synchronous>, transform_indices = @transform_9, window_bounds = array<i64: 1, 32>}, {pipeline_mode = #tpu.pipeline_mode<synchronous>, transform_indices = @transform_10, window_bounds = array<i64: 3, 32>}, {transform_indices = @transform_11, window_bounds = array<i64: 3, 128>}]} {
    %c0 = arith.constant 0 : index
    %c0_0 = arith.constant 0 : index
    %0 = vector.load %arg1[%c0, %c0_0] : memref<3x128xf32, #tpu.memory_space<vmem>>, vector<3x128xf32>
    %c0_1 = arith.constant 0 : index
    %c0_2 = arith.constant 0 : index
    %1 = vector.load %arg2[%c0_1, %c0_2] : memref<3x128xf32, #tpu.memory_space<vmem>>, vector<3x128xf32>
    %2 = vector.extract_strided_slice %0 {offsets = [0, 0], sizes = [1, 128], strides = [1, 1]} : vector<3x128xf32> to vector<1x128xf32>
    %3 = vector.extract_strided_slice %0 {offsets = [1, 0], sizes = [1, 128], strides = [1, 1]} : vector<3x128xf32> to vector<1x128xf32>
    %4 = vector.extract_strided_slice %0 {offsets = [2, 0], sizes = [1, 128], strides = [1, 1]} : vector<3x128xf32> to vector<1x128xf32>
    %5 = vector.extract_strided_slice %1 {offsets = [0, 0], sizes = [1, 128], strides = [1, 1]} : vector<3x128xf32> to vector<1x128xf32>
    %6 = vector.extract_strided_slice %1 {offsets = [1, 0], sizes = [1, 128], strides = [1, 1]} : vector<3x128xf32> to vector<1x128xf32>
    %7 = vector.extract_strided_slice %1 {offsets = [2, 0], sizes = [1, 128], strides = [1, 1]} : vector<3x128xf32> to vector<1x128xf32>
    %8 = arith.subf %2, %5 : vector<1x128xf32>
    %9 = arith.subf %3, %6 : vector<1x128xf32>
    %10 = arith.subf %4, %7 : vector<1x128xf32>
    %11 = arith.mulf %3, %7 : vector<1x128xf32>
    %12 = arith.mulf %4, %6 : vector<1x128xf32>
    %13 = arith.subf %11, %12 : vector<1x128xf32>
    %14 = arith.mulf %4, %5 : vector<1x128xf32>
    %15 = arith.mulf %2, %7 : vector<1x128xf32>
    %16 = arith.subf %14, %15 : vector<1x128xf32>
    %17 = arith.mulf %2, %6 : vector<1x128xf32>
    %18 = arith.mulf %3, %5 : vector<1x128xf32>
    %19 = arith.subf %17, %18 : vector<1x128xf32>
    %20 = arith.mulf %8, %8 : vector<1x128xf32>
    %21 = arith.mulf %9, %9 : vector<1x128xf32>
    %22 = arith.addf %20, %21 : vector<1x128xf32>
    %23 = arith.mulf %10, %10 : vector<1x128xf32>
    %24 = arith.addf %22, %23 : vector<1x128xf32>
    %cst = arith.constant 3.000000e-30 : f32
    %25 = vector.broadcast %cst : f32 to vector<1x128xf32>
    %26 = arith.addf %24, %25 : vector<1x128xf32>
    %27 = math.rsqrt %26 : vector<1x128xf32>
    %28 = arith.mulf %8, %27 : vector<1x128xf32>
    %29 = arith.mulf %9, %27 : vector<1x128xf32>
    %30 = arith.mulf %10, %27 : vector<1x128xf32>
    %31 = arith.mulf %13, %13 : vector<1x128xf32>
    %32 = arith.mulf %16, %16 : vector<1x128xf32>
    %33 = arith.addf %31, %32 : vector<1x128xf32>
    %34 = arith.mulf %19, %19 : vector<1x128xf32>
    %35 = arith.addf %33, %34 : vector<1x128xf32>
    %cst_3 = arith.constant 3.000000e-30 : f32
    %36 = vector.broadcast %cst_3 : f32 to vector<1x128xf32>
    %37 = arith.addf %35, %36 : vector<1x128xf32>
    %38 = math.rsqrt %37 : vector<1x128xf32>
    %39 = arith.mulf %13, %38 : vector<1x128xf32>
    %40 = arith.mulf %16, %38 : vector<1x128xf32>
    %41 = arith.mulf %19, %38 : vector<1x128xf32>
    %42 = arith.mulf %29, %41 : vector<1x128xf32>
    %43 = arith.mulf %30, %40 : vector<1x128xf32>
    %44 = arith.subf %42, %43 : vector<1x128xf32>
    %45 = arith.mulf %30, %39 : vector<1x128xf32>
    %46 = arith.mulf %28, %41 : vector<1x128xf32>
    %47 = arith.subf %45, %46 : vector<1x128xf32>
    %48 = arith.mulf %28, %40 : vector<1x128xf32>
    %49 = arith.mulf %29, %39 : vector<1x128xf32>
    %50 = arith.subf %48, %49 : vector<1x128xf32>
    %51 = arith.mulf %2, %28 : vector<1x128xf32>
    %52 = arith.mulf %3, %29 : vector<1x128xf32>
    %53 = arith.addf %51, %52 : vector<1x128xf32>
    %54 = arith.mulf %4, %30 : vector<1x128xf32>
    %55 = arith.addf %53, %54 : vector<1x128xf32>
    %56 = arith.mulf %2, %39 : vector<1x128xf32>
    %57 = arith.mulf %3, %40 : vector<1x128xf32>
    %58 = arith.addf %56, %57 : vector<1x128xf32>
    %59 = arith.mulf %4, %41 : vector<1x128xf32>
    %60 = arith.addf %58, %59 : vector<1x128xf32>
    %61 = arith.mulf %2, %44 : vector<1x128xf32>
    %62 = arith.mulf %3, %47 : vector<1x128xf32>
    %63 = arith.addf %61, %62 : vector<1x128xf32>
    %64 = arith.mulf %4, %50 : vector<1x128xf32>
    %65 = arith.addf %63, %64 : vector<1x128xf32>
    %66 = arith.mulf %5, %28 : vector<1x128xf32>
    %67 = arith.mulf %6, %29 : vector<1x128xf32>
    %68 = arith.addf %66, %67 : vector<1x128xf32>
    %69 = arith.mulf %7, %30 : vector<1x128xf32>
    %70 = arith.addf %68, %69 : vector<1x128xf32>
    %71 = arith.mulf %5, %39 : vector<1x128xf32>
    %72 = arith.mulf %6, %40 : vector<1x128xf32>
    %73 = arith.addf %71, %72 : vector<1x128xf32>
    %74 = arith.mulf %7, %41 : vector<1x128xf32>
    %75 = arith.addf %73, %74 : vector<1x128xf32>
    %76 = arith.mulf %5, %44 : vector<1x128xf32>
    %77 = arith.mulf %6, %47 : vector<1x128xf32>
    %78 = arith.addf %76, %77 : vector<1x128xf32>
    %79 = arith.mulf %7, %50 : vector<1x128xf32>
    %80 = arith.addf %78, %79 : vector<1x128xf32>
    %cst_4 = arith.constant 0.000000e+00 : f32
    %81 = vector.broadcast %cst_4 : f32 to vector<1x128xf32>
    %82 = tpu.concatenate %55, %60, %65, %70, %75, %80, %81, %81 in 0 : vector<1x128xf32>, vector<1x128xf32>, vector<1x128xf32>, vector<1x128xf32>, vector<1x128xf32>, vector<1x128xf32>, vector<1x128xf32>, vector<1x128xf32> -> vector<8x128xf32>
    %c0_5 = arith.constant 0 : index
    %c0_6 = arith.constant 0 : index
    %83 = vector.load %arg3[%c0_5, %c0_6] : memref<128x32xbf16, #tpu.memory_space<vmem>>, vector<128x32xbf16>
    %c0_7 = arith.constant 0 : index
    %c0_8 = arith.constant 0 : index
    %84 = vector.load %arg5[%c0_7, %c0_8] : memref<32x32xbf16, #tpu.memory_space<vmem>>, vector<32x32xbf16>
    %cst_9 = arith.constant dense<0.000000e+00> : vector<128x32xf32>
    %85 = tpu.matmul %83, %84, %cst_9 {dimension_numbers = #tpu.dot_dimension_numbers<[1], [0], [0], [1], [0, 0, 1, 1], [], []>} : vector<128x32xbf16>, vector<32x32xbf16>, vector<128x32xf32> -> vector<128x32xf32>
    %c0_10 = arith.constant 0 : index
    %c0_11 = arith.constant 0 : index
    %86 = vector.load %arg4[%c0_10, %c0_11] : memref<128x32xbf16, #tpu.memory_space<vmem>>, vector<128x32xbf16>
    %c0_12 = arith.constant 0 : index
    %c0_13 = arith.constant 0 : index
    %87 = vector.load %arg6[%c0_12, %c0_13] : memref<32x32xbf16, #tpu.memory_space<vmem>>, vector<32x32xbf16>
    %cst_14 = arith.constant dense<0.000000e+00> : vector<128x32xf32>
    %88 = tpu.matmul %86, %87, %cst_14 {dimension_numbers = #tpu.dot_dimension_numbers<[1], [0], [0], [1], [0, 0, 1, 1], [], []>} : vector<128x32xbf16>, vector<32x32xbf16>, vector<128x32xf32> -> vector<128x32xf32>
    %89 = arith.addf %85, %88 : vector<128x32xf32>
    %c0_15 = arith.constant 0 : index
    %c0_16 = arith.constant 0 : index
    %90 = vector.load %arg7[%c0_15, %c0_16] : memref<8x32xf32, #tpu.memory_space<vmem>>, vector<8x32xf32>
    %cst_17 = arith.constant dense<0.000000e+00> : vector<128x32xf32>
    %91 = tpu.matmul %82, %90, %cst_17 {dimension_numbers = #tpu.dot_dimension_numbers<[0], [0], [1], [1], [0, 1, 1, 1], [], []>} : vector<8x128xf32>, vector<8x32xf32>, vector<128x32xf32> -> vector<128x32xf32>
    %92 = arith.addf %89, %91 : vector<128x32xf32>
    %c0_18 = arith.constant 0 : index
    %c0_19 = arith.constant 0 : index
    %93 = vector.load %arg8[%c0_18, %c0_19] : memref<1x32xf32, #tpu.memory_space<vmem>>, vector<1x32xf32>
    %94 = vector.broadcast %93 : vector<1x32xf32> to vector<128x32xf32>
    %95 = arith.addf %92, %94 : vector<128x32xf32>
    %96 = arith.negf %95 : vector<128x32xf32>
    %97 = math.exp %96 : vector<128x32xf32>
    %cst_20 = arith.constant 1.000000e+00 : f32
    %98 = vector.broadcast %cst_20 : f32 to vector<128x32xf32>
    %99 = arith.addf %98, %97 : vector<128x32xf32>
    %100 = arith.divf %98, %99 : vector<128x32xf32>
    %101 = arith.mulf %95, %100 : vector<128x32xf32>
    %cst_21 = arith.constant dense<0.000000e+00> : vector<128xf32>
    %102 = vector.multi_reduction <add>, %101, %cst_21 [1] : vector<128x32xf32> to vector<128xf32>
    %103 = vector.shape_cast %102 : vector<128xf32> to vector<128x1xf32>
    %104 = arith.mulf %101, %101 : vector<128x32xf32>
    %cst_22 = arith.constant dense<0.000000e+00> : vector<128xf32>
    %105 = vector.multi_reduction <add>, %104, %cst_22 [1] : vector<128x32xf32> to vector<128xf32>
    %106 = vector.shape_cast %105 : vector<128xf32> to vector<128x1xf32>
    %cst_23 = arith.constant 3.125000e-02 : f32
    %107 = vector.broadcast %cst_23 : f32 to vector<128x1xf32>
    %108 = arith.mulf %103, %107 : vector<128x1xf32>
    %cst_24 = arith.constant 3.125000e-02 : f32
    %109 = vector.broadcast %cst_24 : f32 to vector<128x1xf32>
    %110 = arith.mulf %106, %109 : vector<128x1xf32>
    %111 = arith.mulf %108, %108 : vector<128x1xf32>
    %112 = arith.subf %110, %111 : vector<128x1xf32>
    %cst_25 = arith.constant 0.000000e+00 : f32
    %113 = vector.broadcast %cst_25 : f32 to vector<128x1xf32>
    %114 = arith.maximumf %112, %113 : vector<128x1xf32>
    %115 = vector.broadcast %108 : vector<128x1xf32> to vector<128x32xf32>
    %116 = arith.subf %101, %115 : vector<128x32xf32>
    %cst_26 = arith.constant 9.99999974E-6 : f32
    %117 = vector.broadcast %cst_26 : f32 to vector<128x1xf32>
    %118 = arith.addf %114, %117 : vector<128x1xf32>
    %119 = math.rsqrt %118 : vector<128x1xf32>
    %120 = vector.broadcast %119 : vector<128x1xf32> to vector<128x32xf32>
    %121 = arith.mulf %116, %120 : vector<128x32xf32>
    %c0_27 = arith.constant 0 : index
    %c0_28 = arith.constant 0 : index
    %122 = vector.load %arg9[%c0_27, %c0_28] : memref<1x32xf32, #tpu.memory_space<vmem>>, vector<1x32xf32>
    %123 = vector.broadcast %122 : vector<1x32xf32> to vector<128x32xf32>
    %124 = arith.mulf %121, %123 : vector<128x32xf32>
    %c0_29 = arith.constant 0 : index
    %c0_30 = arith.constant 0 : index
    %125 = vector.load %arg10[%c0_29, %c0_30] : memref<1x32xf32, #tpu.memory_space<vmem>>, vector<1x32xf32>
    %126 = vector.broadcast %125 : vector<1x32xf32> to vector<128x32xf32>
    %127 = arith.addf %124, %126 : vector<128x32xf32>
    %c0_31 = arith.constant 0 : index
    %c0_32 = arith.constant 0 : index
    %128 = vector.load %arg11[%c0_31, %c0_32] : memref<3x32xf32, #tpu.memory_space<vmem>>, vector<3x32xf32>
    %cst_33 = arith.constant dense<0.000000e+00> : vector<3x128xf32>
    %129 = tpu.matmul %128, %127, %cst_33 {dimension_numbers = #tpu.dot_dimension_numbers<[1], [1], [0], [0], [0, 0, 1, 0], [], []>} : vector<3x32xf32>, vector<128x32xf32>, vector<3x128xf32> -> vector<3x128xf32>
    %130 = vector.extract_strided_slice %129 {offsets = [0, 0], sizes = [1, 128], strides = [1, 1]} : vector<3x128xf32> to vector<1x128xf32>
    %131 = vector.extract_strided_slice %129 {offsets = [1, 0], sizes = [1, 128], strides = [1, 1]} : vector<3x128xf32> to vector<1x128xf32>
    %132 = vector.extract_strided_slice %129 {offsets = [2, 0], sizes = [1, 128], strides = [1, 1]} : vector<3x128xf32> to vector<1x128xf32>
    %133 = arith.mulf %130, %28 : vector<1x128xf32>
    %134 = arith.mulf %131, %39 : vector<1x128xf32>
    %135 = arith.addf %133, %134 : vector<1x128xf32>
    %136 = arith.mulf %132, %44 : vector<1x128xf32>
    %137 = arith.addf %135, %136 : vector<1x128xf32>
    %138 = arith.mulf %130, %29 : vector<1x128xf32>
    %139 = arith.mulf %131, %40 : vector<1x128xf32>
    %140 = arith.addf %138, %139 : vector<1x128xf32>
    %141 = arith.mulf %132, %47 : vector<1x128xf32>
    %142 = arith.addf %140, %141 : vector<1x128xf32>
    %143 = arith.mulf %130, %30 : vector<1x128xf32>
    %144 = arith.mulf %131, %41 : vector<1x128xf32>
    %145 = arith.addf %143, %144 : vector<1x128xf32>
    %146 = arith.mulf %132, %50 : vector<1x128xf32>
    %147 = arith.addf %145, %146 : vector<1x128xf32>
    %148 = tpu.concatenate %137, %142, %147 in 0 : vector<1x128xf32>, vector<1x128xf32>, vector<1x128xf32> -> vector<3x128xf32>
    %cst_34 = arith.constant -1.000000e+03 : f32
    %cst_35 = arith.constant 1.000000e+03 : f32
    %149 = vector.broadcast %cst_34 : f32 to vector<3x128xf32>
    %150 = arith.maximumf %149, %148 : vector<3x128xf32>
    %151 = vector.broadcast %cst_35 : f32 to vector<3x128xf32>
    %152 = arith.minimumf %151, %150 : vector<3x128xf32>
    %c0_36 = arith.constant 0 : index
    %c0_37 = arith.constant 0 : index
    %153 = vector.load %arg12[%c0_36, %c0_37] : memref<3x128xf32, #tpu.memory_space<vmem>>, vector<3x128xf32>
    tpu.vector_store %arg12[%c0_36, %c0_37], %152 {strides = array<i32>} : memref<3x128xf32, #tpu.memory_space<vmem>>, vector<3x128xf32>,
    return
  }
  func.func @transform_0(%arg0: i32) -> (i32, i32) {
    %c0_i32 = arith.constant 0 : i32
    %c0_i32_0 = arith.constant 0 : i32
    return %c0_i32, %arg0 : i32, i32
  }
  func.func @transform_1(%arg0: i32) -> (i32, i32) {
    %c0_i32 = arith.constant 0 : i32
    %c0_i32_0 = arith.constant 0 : i32
    return %c0_i32, %arg0 : i32, i32
  }
  func.func @transform_2(%arg0: i32) -> (i32, i32) {
    %c0_i32 = arith.constant 0 : i32
    %c0_i32_0 = arith.constant 0 : i32
    return %arg0, %c0_i32 : i32, i32
  }
  func.func @transform_3(%arg0: i32) -> (i32, i32) {
    %c0_i32 = arith.constant 0 : i32
    %c0_i32_0 = arith.constant 0 : i32
    return %arg0, %c0_i32 : i32, i32
  }
  func.func @transform_4(%arg0: i32) -> (i32, i32) {
    %c0_i32 = arith.constant 0 : i32
    %c0_i32_0 = arith.constant 0 : i32
    %c0_i32_1 = arith.constant 0 : i32
    return %c0_i32, %c0_i32_0 : i32, i32
  }
  func.func @transform_5(%arg0: i32) -> (i32, i32) {
    %c0_i32 = arith.constant 0 : i32
    %c0_i32_0 = arith.constant 0 : i32
    %c0_i32_1 = arith.constant 0 : i32
    return %c0_i32, %c0_i32_0 : i32, i32
  }
  func.func @transform_6(%arg0: i32) -> (i32, i32) {
    %c0_i32 = arith.constant 0 : i32
    %c0_i32_0 = arith.constant 0 : i32
    %c0_i32_1 = arith.constant 0 : i32
    return %c0_i32, %c0_i32_0 : i32, i32
  }
  func.func @transform_7(%arg0: i32) -> (i32, i32) {
    %c0_i32 = arith.constant 0 : i32
    %c0_i32_0 = arith.constant 0 : i32
    %c0_i32_1 = arith.constant 0 : i32
    return %c0_i32, %c0_i32_0 : i32, i32
  }
  func.func @transform_8(%arg0: i32) -> (i32, i32) {
    %c0_i32 = arith.constant 0 : i32
    %c0_i32_0 = arith.constant 0 : i32
    %c0_i32_1 = arith.constant 0 : i32
    return %c0_i32, %c0_i32_0 : i32, i32
  }
  func.func @transform_9(%arg0: i32) -> (i32, i32) {
    %c0_i32 = arith.constant 0 : i32
    %c0_i32_0 = arith.constant 0 : i32
    %c0_i32_1 = arith.constant 0 : i32
    return %c0_i32, %c0_i32_0 : i32, i32
  }
  func.func @transform_10(%arg0: i32) -> (i32, i32) {
    %c0_i32 = arith.constant 0 : i32
    %c0_i32_0 = arith.constant 0 : i32
    %c0_i32_1 = arith.constant 0 : i32
    return %c0_i32, %c0_i32_0 : i32, i32
  }
  func.func @transform_11(%arg0: i32) -> (i32, i32) {
    %c0_i32 = arith.constant 0 : i32
    %c0_i32_0 = arith.constant 0 : i32
    return %c0_i32, %arg0 : i32, i32
  }
}

</mosaic_0001>

<bundles_post_ra>
// kernel: tpu_custom_call.1
= control target key start
LH: loop header
LB: loop body
LE: loop exit
PB: predicated region body
PF: predicated region fallthrough
CT: control target
= control target key end

     0   :  { %16 = vsyncpa [#allocation3], 0  ;;  %s2985_s0 = inlined_call_operand.hbm [shape: f32[3,128], index: 0, kind: input, shape index: {}]   ;;  %s2986_s1 = inlined_call_operand.hbm [shape: f32[3,128], index: 1, kind: input, shape index: {}]   ;;  %s2987_s2 = inlined_call_operand.hbm [shape: bf16[128,32], index: 2, kind: input, shape index: {}]   ;;  %s2988_s3 = inlined_call_operand.hbm [shape: bf16[128,32], index: 3, kind: input, shape index: {}]   ;;  %s2989_s4 = inlined_call_operand.hbm [shape: bf16[32,32], index: 4, kind: input, shape index: {}]   ;;  %s2990_s5 = inlined_call_operand.hbm [shape: bf16[32,32], index: 5, kind: input, shape index: {}]   ;;  %s2991_s6 = inlined_call_operand.hbm [shape: f32[8,32], index: 6, kind: input, shape index: {}]   ;;  %s2992_s7 = inlined_call_operand.hbm [shape: f32[1,32], index: 7, kind: input, shape index: {}]   ;;  %s2993_s8 = inlined_call_operand.hbm [shape: f32[1,32], index: 8, kind: input, shape index: {}]   ;;  %s2994_s9 = inlined_call_operand.hbm [shape: f32[1,32], index: 9, kind: input, shape index: {}]   ;;  %s2995_s10 = inlined_call_operand.hbm [shape: f32[3,32], index: 10, kind: input, shape index: {}]   ;;  %s2996_s11 = inlined_call_operand.hbm [shape: f32[3,128], index: 11, kind: output, shape index: {}]  }
   0x1   :  { %17 = vsyncpa [#allocation6], 0 }
   0x2   :  { %18 = vsyncpa [#allocation9], 0 }
   0x3   :  { %19 = vsyncpa [#allocation12], 0 }
   0x4   :  { %20 = vsyncpa [#allocation15], 0 }
   0x5   :  { %21 = vsyncpa [#allocation18], 0 }
   0x6   :  { %22 = vsyncpa [#allocation4], 0  ;;  %s2342_s17 = smov [#allocation5]   ;;  %s2064_s21 = scalar_lea.hbm %s2986_s1, 64 }
   0x7   :  { %s39_s18 = sshll.u32 %s2342_s17, 4  ;;  %p2065_p0 = scmp.ne.s32.totalorder %s2986_s1, %s2064_s21  ;;  %s40_s18 = int_to_ptr.vmem [resolvable:$true] %s39_s18 }
   0x8   :  { %p2068_p1 = scmp.lt.u32.totalorder %s2064_s21, %s2986_s1 }
   0xa   :  { %p2070_p2 = pnand %p2068_p1, %p2065_p0 }
   0xc   :  { %2073 = shalt.err (!%p2070_p2)
}
   0xd   :  { %s2074_s26 = scalar_lea.vmem %s40_s18, 64  ;;  %p2079_p4 = scmp.lt.s32.totalorder %s40_s18, %s40_s18 }
   0xe   :  { %p2075_p3 = scmp.ne.s32.totalorder %s40_s18, %s2074_s26  ;;  %p2080_p5 = scmp.lt.s32.totalorder %s2074_s26, %s2074_s26 }
  0x10   :  { %p2081_p6 = por %p2080_p5, %p2079_p4 }
  0x12   :  { %p2082_p7 = pnand %p2081_p6, %p2075_p3 }
  0x14   :  { %2085 = shalt.err (!%p2082_p7)
}
  0x15   :  { %42 = dma.hbm_to_vmem [thread:$0]  %s2986_s1, 64, %s40_s18, [#allocation6]  }
  0x16   :  { %s2343_s29 = smov [#allocation8]   ;;  %s2344_s12 = smov [#allocation11]  }
  0x17   :  { %s60_s30 = sshll.u32 %s2343_s29, 4  ;;  %s84_s13 = sshll.u32 %s2344_s12, 4  ;;  %s61_s30 = int_to_ptr.vmem [resolvable:$true] %s60_s30  ;;  %s85_s13 = int_to_ptr.vmem [resolvable:$true] %s84_s13 }
  0x18   :  { %s2086_s16 = scalar_lea.hbm %s2988_s3, 1024 }
  0x19   :  { %p2087_p8 = scmp.ne.s32.totalorder %s2988_s3, %s2086_s16  ;;  %p2090_p9 = scmp.lt.u32.totalorder %s2086_s16, %s2988_s3 }
  0x1b   :  { %p2092_p10 = pnand %p2090_p9, %p2087_p8 }
  0x1d   :  { %2095 = shalt.err (!%p2092_p10)
}
  0x1e   :  { %s2096_s1 = scalar_lea.vmem %s61_s30, 1024  ;;  %p2101_p12 = scmp.lt.s32.totalorder %s61_s30, %s61_s30 }
  0x1f   :  { %p2097_p11 = scmp.ne.s32.totalorder %s61_s30, %s2096_s1  ;;  %p2102_p13 = scmp.lt.s32.totalorder %s2096_s1, %s2096_s1 }
  0x21   :  { %p2103_p0 = por %p2102_p13, %p2101_p12 }
  0x23   :  { %p2104_p1 = pnand %p2103_p0, %p2097_p11 }
  0x25   :  { %2107 = shalt.err (!%p2104_p1)
}
  0x26   :  { %s2345_s18 = smov 64   ;;  %s2346_s22 = smov 4  }
  0x27   :  { %66 = dma.hbm_to_vmem [thread:$0]  %s2988_s3, 1024, %s61_s30, [#allocation9], %s2345_s18, %s2345_s18, %s2346_s22  }
  0x28   :  { %s2108_s27 = scalar_lea.hbm %s2990_s5, 256 }
  0x29   :  { %p2109_p2 = scmp.ne.s32.totalorder %s2990_s5, %s2108_s27  ;;  %p2112_p3 = scmp.lt.u32.totalorder %s2108_s27, %s2990_s5 }
  0x2b   :  { %p2114_p4 = pnand %p2112_p3, %p2109_p2 }
  0x2d   :  { %2117 = shalt.err (!%p2114_p4)
}
  0x2e   :  { %s2118_s15 = scalar_lea.vmem %s85_s13, 256  ;;  %p2123_p6 = scmp.lt.s32.totalorder %s85_s13, %s85_s13 }
  0x2f   :  { %p2119_p5 = scmp.ne.s32.totalorder %s85_s13, %s2118_s15  ;;  %p2124_p7 = scmp.lt.s32.totalorder %s2118_s15, %s2118_s15 }
  0x31   :  { %p2125_p8 = por %p2124_p7, %p2123_p6 }
  0x33   :  { %p2126_p9 = pnand %p2125_p8, %p2119_p5 }
  0x35   :  { %2129 = shalt.err (!%p2126_p9)
}
  0x36   :  { %90 = dma.hbm_to_vmem [thread:$0]  %s2990_s5, 256, %s85_s13, [#allocation12], %s2345_s18, %s2345_s18, %s2346_s22  }
  0x37   :  { %s2347_s16 = smov [#allocation14]   ;;  %s2348_s19 = smov [#allocation17]  }
  0x38   :  { %s107_s17 = sshll.u32 %s2347_s16, 4  ;;  %s127_s20 = sshll.u32 %s2348_s19, 4  ;;  %s108_s17 = int_to_ptr.vmem [resolvable:$true] %s107_s17  ;;  %s128_s20 = int_to_ptr.vmem [resolvable:$true] %s127_s20 }
  0x39   :  { %s2130_s23 = scalar_lea.hbm %s2992_s7, 16 }
  0x3a   :  { %p2131_p10 = scmp.ne.s32.totalorder %s2992_s7, %s2130_s23  ;;  %p2134_p11 = scmp.lt.u32.totalorder %s2130_s23, %s2992_s7 }
  0x3c   :  { %p2136_p12 = pnand %p2134_p11, %p2131_p10 }
  0x3e   :  { %2139 = shalt.err (!%p2136_p12)
}
  0x3f   :  { %s2140_s5 = scalar_lea.vmem %s108_s17, 16  ;;  %s2144_s13 = scalar_lea.vmem %s108_s17, 32 }
  0x40   :  { %p2141_p13 = scmp.ne.s32.totalorder %s108_s17, %s2140_s5  ;;  %p2145_p0 = scmp.lt.s32.totalorder %s108_s17, %s108_s17 }
  0x41   :  { %p2146_p1 = scmp.lt.s32.totalorder %s2144_s13, %s2140_s5 }
  0x43   :  { %p2147_p2 = por %p2146_p1, %p2145_p0 }
  0x45   :  { %p2148_p3 = pnand %p2147_p2, %p2141_p13 }
  0x47   :  { %2151 = shalt.err (!%p2148_p3)
}
  0x48   :  { %110 = dma.hbm_to_vmem [thread:$0]  %s2992_s7, 16, %s108_s17, [#allocation15]  }
  0x49   :  { %s2152_s15 = scalar_lea.hbm %s2994_s9, 16 }
  0x4a   :  { %p2153_p4 = scmp.ne.s32.totalorder %s2994_s9, %s2152_s15  ;;  %p2156_p5 = scmp.lt.u32.totalorder %s2152_s15, %s2994_s9 }
  0x4c   :  { %p2158_p6 = pnand %p2156_p5, %p2153_p4 }
  0x4e   :  { %2161 = shalt.err (!%p2158_p6)
}
  0x4f   :  { %s2162_s21 = scalar_lea.vmem %s128_s20, 16  ;;  %s2166_s1 = scalar_lea.vmem %s128_s20, 32 }
  0x50   :  { %p2163_p7 = scmp.ne.s32.totalorder %s128_s20, %s2162_s21  ;;  %p2167_p8 = scmp.lt.s32.totalorder %s128_s20, %s128_s20 }
  0x51   :  { %p2168_p9 = scmp.lt.s32.totalorder %s2166_s1, %s2162_s21 }
  0x53   :  { %p2169_p10 = por %p2168_p9, %p2167_p8 }
  0x55   :  { %p2170_p11 = pnand %p2169_p10, %p2163_p7 }
  0x57   :  { %2173 = shalt.err (!%p2170_p11)
}
  0x58   :  { %130 = dma.hbm_to_vmem [thread:$0]  %s2994_s9, 16, %s128_s20, [#allocation18]  }
  0x59   :  { %s2349_s23 = smov [#allocation2]   ;;  %s2350_s25 = smov [#allocation7]  }
  0x5a   :  { %s29_s24 = sshll.u32 %s2349_s23, 4  ;;  %s48_s26 = sshll.u32 %s2350_s25, 4  ;;  %s30_s24 = int_to_ptr.vmem [resolvable:$true] %s29_s24  ;;  %s49_s26 = int_to_ptr.vmem [resolvable:$true] %s48_s26 }
  0x5b   :  { %s2174_s13 = scalar_lea.hbm %s2985_s0, 64 }
  0x5c   :  { %p2175_p12 = scmp.ne.s32.totalorder %s2985_s0, %s2174_s13  ;;  %p2178_p13 = scmp.lt.u32.totalorder %s2174_s13, %s2985_s0 }
  0x5e   :  { %p2180_p0 = pnand %p2178_p13, %p2175_p12 }
  0x60   :  { %2183 = shalt.err (!%p2180_p0)
}
  0x61   :  { %s2184_s9 = scalar_lea.vmem %s30_s24, 64  ;;  %p2189_p2 = scmp.lt.s32.totalorder %s30_s24, %s30_s24 }
  0x62   :  { %p2185_p1 = scmp.ne.s32.totalorder %s30_s24, %s2184_s9  ;;  %p2190_p3 = scmp.lt.s32.totalorder %s2184_s9, %s2184_s9 }
  0x64   :  { %p2191_p4 = por %p2190_p3, %p2189_p2 }
  0x66   :  { %p2192_p5 = pnand %p2191_p4, %p2185_p1 }
  0x68   :  { %2195 = shalt.err (!%p2192_p5)
}
  0x69   :  { %32 = dma.hbm_to_vmem [thread:$0]  %s2985_s0, 64, %s30_s24, [#allocation3]  }
  0x6a   :  { %s2196_s16 = scalar_lea.hbm %s2987_s2, 1024 }
  0x6b   :  { %p2197_p6 = scmp.ne.s32.totalorder %s2987_s2, %s2196_s16  ;;  %p2200_p7 = scmp.lt.u32.totalorder %s2196_s16, %s2987_s2 }
  0x6d   :  { %p2202_p8 = pnand %p2200_p7, %p2197_p6 }
  0x6f   :  { %2205 = shalt.err (!%p2202_p8)
}
  0x70   :  { %s2206_s17 = scalar_lea.vmem %s49_s26, 1024  ;;  %p2211_p10 = scmp.lt.s32.totalorder %s49_s26, %s49_s26 }
  0x71   :  { %p2207_p9 = scmp.ne.s32.totalorder %s49_s26, %s2206_s17  ;;  %p2212_p11 = scmp.lt.s32.totalorder %s2206_s17, %s2206_s17 }
  0x73   :  { %p2213_p12 = por %p2212_p11, %p2211_p10 }
  0x75   :  { %p2214_p13 = pnand %p2213_p12, %p2207_p9 }
  0x77   :  { %2217 = shalt.err (!%p2214_p13)
}
  0x78   :  { %54 = dma.hbm_to_vmem [thread:$0]  %s2987_s2, 1024, %s49_s26, [#allocation6], %s2345_s18, %s2345_s18, %s2346_s22  }
  0x79   :  { %s2351_s24 = smov [#allocation10]   ;;  %s2352_s27 = smov [#allocation13]  }
  0x7a   :  { %s72_s25 = sshll.u32 %s2351_s24, 4  ;;  %s97_s5 = sshll.u32 %s2352_s27, 4  ;;  %s73_s25 = int_to_ptr.vmem [resolvable:$true] %s72_s25  ;;  %s98_s5 = int_to_ptr.vmem [resolvable:$true] %s97_s5 }
  0x7b   :  { %s2218_s29 = scalar_lea.hbm %s2989_s4, 256 }
  0x7c   :  { %p2219_p0 = scmp.ne.s32.totalorder %s2989_s4, %s2218_s29  ;;  %p2222_p1 = scmp.lt.u32.totalorder %s2218_s29, %s2989_s4 }
  0x7e   :  { %p2224_p2 = pnand %p2222_p1, %p2219_p0 }
  0x80   :  { %2227 = shalt.err (!%p2224_p2)
}
  0x81   :  { %s2228_s2 = scalar_lea.vmem %s73_s25, 256  ;;  %p2233_p4 = scmp.lt.s32.totalorder %s73_s25, %s73_s25 }
  0x82   :  { %p2229_p3 = scmp.ne.s32.totalorder %s73_s25, %s2228_s2  ;;  %p2234_p5 = scmp.lt.s32.totalorder %s2228_s2, %s2228_s2 }
  0x84   :  { %p2235_p6 = por %p2234_p5, %p2233_p4 }
  0x86   :  { %p2236_p7 = pnand %p2235_p6, %p2229_p3 }
  0x88   :  { %2239 = shalt.err (!%p2236_p7)
}
  0x89   :  { %78 = dma.hbm_to_vmem [thread:$0]  %s2989_s4, 256, %s73_s25, [#allocation9], %s2345_s18, %s2345_s18, %s2346_s22  }
  0x8a   :  { %s2240_s16 = scalar_lea.hbm %s2991_s6, 128 }
  0x8b   :  { %p2241_p8 = scmp.ne.s32.totalorder %s2991_s6, %s2240_s16  ;;  %p2244_p9 = scmp.lt.u32.totalorder %s2240_s16, %s2991_s6 }
  0x8d   :  { %p2246_p10 = pnand %p2244_p9, %p2241_p8 }
  0x8f   :  { %2249 = shalt.err (!%p2246_p10)
}
  0x90   :  { %s2250_s17 = scalar_lea.vmem %s98_s5, 128  ;;  %p2255_p12 = scmp.lt.s32.totalorder %s98_s5, %s98_s5 }
  0x91   :  { %p2251_p11 = scmp.ne.s32.totalorder %s98_s5, %s2250_s17  ;;  %p2256_p13 = scmp.lt.s32.totalorder %s2250_s17, %s2250_s17 }
  0x93   :  { %p2257_p0 = por %p2256_p13, %p2255_p12 }
  0x95   :  { %p2258_p1 = pnand %p2257_p0, %p2251_p11 }
  0x97   :  { %2261 = shalt.err (!%p2258_p1)
}
  0x98   :  { %100 = dma.hbm_to_vmem [thread:$0]  %s2991_s6, 128, %s98_s5, [#allocation12]  }
  0x99   :  { %s2353_s22 = smov [#allocation16]   ;;  %s2354_s23 = smov [#allocation19]  }
  0x9a   :  { %s117_s0 = sshll.u32 %s2353_s22, 4  ;;  %s137_s24 = sshll.u32 %s2354_s23, 4  ;;  %s118_s0 = int_to_ptr.vmem [resolvable:$true] %s117_s0  ;;  %s138_s24 = int_to_ptr.vmem [resolvable:$true] %s137_s24 }
  0x9b   :  { %s2262_s13 = scalar_lea.hbm %s2993_s8, 16 }
  0x9c   :  { %p2263_p2 = scmp.ne.s32.totalorder %s2993_s8, %s2262_s13  ;;  %p2266_p3 = scmp.lt.u32.totalorder %s2262_s13, %s2993_s8 }
  0x9e   :  { %p2268_p4 = pnand %p2266_p3, %p2263_p2 }
  0xa0   :  { %2271 = shalt.err (!%p2268_p4)
}
  0xa1   :  { %s2272_s6 = scalar_lea.vmem %s118_s0, 16  ;;  %s2276_s5 = scalar_lea.vmem %s118_s0, 32 }
  0xa2   :  { %p2273_p5 = scmp.ne.s32.totalorder %s118_s0, %s2272_s6  ;;  %p2277_p6 = scmp.lt.s32.totalorder %s118_s0, %s118_s0 }
  0xa3   :  { %p2278_p7 = scmp.lt.s32.totalorder %s2276_s5, %s2272_s6 }
  0xa5   :  { %p2279_p8 = por %p2278_p7, %p2277_p6 }
  0xa7   :  { %p2280_p9 = pnand %p2279_p8, %p2273_p5 }
  0xa9   :  { %2283 = shalt.err (!%p2280_p9)
}
  0xaa   :  { %120 = dma.hbm_to_vmem [thread:$0]  %s2993_s8, 16, %s118_s0, [#allocation15]  }
  0xab   :  { %s2284_s15 = scalar_lea.hbm %s2995_s10, 64 }
  0xac   :  { %p2285_p10 = scmp.ne.s32.totalorder %s2995_s10, %s2284_s15  ;;  %p2288_p11 = scmp.lt.u32.totalorder %s2284_s15, %s2995_s10 }
  0xae   :  { %p2290_p12 = pnand %p2288_p11, %p2285_p10 }
  0xb0   :  { %2293 = shalt.err (!%p2290_p12)
}
  0xb1   :  { %s2294_s21 = scalar_lea.vmem %s138_s24, 64  ;;  %p2299_p0 = scmp.lt.s32.totalorder %s138_s24, %s138_s24 }
  0xb2   :  { %p2295_p13 = scmp.ne.s32.totalorder %s138_s24, %s2294_s21  ;;  %p2300_p1 = scmp.lt.s32.totalorder %s2294_s21, %s2294_s21 }
  0xb4   :  { %p2301_p2 = por %p2300_p1, %p2299_p0 }
  0xb6   :  { %p2302_p3 = pnand %p2301_p2, %p2295_p13 }
  0xb8   :  { %2305 = shalt.err (!%p2302_p3)
}
  0xb9   :  { %140 = dma.hbm_to_vmem [thread:$0]  %s2995_s10, 64, %s138_s24, [#allocation18]  }
  0xba   :  { %2328 = dma.done.wait [#allocation3], 64  }
  0xbb   :  { %2329 = vsyncadd [#allocation3], 4294967232 }
  0xbc   :  { %2330 = dma.done.wait [#allocation6], 1088  }
  0xbd   :  { %2331 = vsyncadd [#allocation6], 4294966208 }
  0xbe   :  { %2332 = dma.done.wait [#allocation9], 1280  }
  0xbf   :  { %2333 = vsyncadd [#allocation9], 4294966016 }
  0xc0   :  { %2334 = dma.done.wait [#allocation12], 384  }
  0xc1   :  { %2335 = vsyncadd [#allocation12], 4294966912 }
  0xc2   :  { %2336 = dma.done.wait [#allocation15], 32  }
  0xc3   :  { %2337 = vsyncadd [#allocation15], 4294967264 }
  0xc4   :  { %2338 = dma.done.wait [#allocation18], 80  }
  0xc5   :  { %2339 = vsyncadd [#allocation18], 4294967216  ;;  %vm466_vm0 = vcmask 261120   ;;  %v2563_v0 = vld [vmem:[#allocation2] sm:$0x7]  ;;  %v1944_v6 = vld [vmem:[#allocation11] sm:$0xff]  }
  0xc6   :  { %v2565_v1 = vld [vmem:[#allocation5] sm:$0x7]  ;;  %1778 = vmatprep.subr.bf16.mxu0 %v1944_v6  ;;  %v1946_v12 = vld [vmem:[#allocation8] sm:$0xff]   ;;  %v1947_v19 = vld [vmem:[#allocation8 + $0x8] sm:$0xff]   ;;  %vm360_vm1 = vcmask 1040384   ;;  %vm362_vm2 = vcmask 1041408  }
  0xc7   :  { %v177_v2 = vsub.f32 %v2563_v0, %v2565_v1  ;;  %v179_v3 = vrot.slane %v2565_v1, 1  ;;  %v182_v4 = vrot.slane %v2565_v1, 7  ;;  %v189_v5 = vrot.slane %v2565_v1, 6  ;;  %v1945_v8 = vld [vmem:[#allocation11 + $0x8] sm:$0xff]   ;;  %1779 = vmatpush3.bf16.msra.mxu0 %v1944_v6  ;;  %1782 = vmatprep.mubr.msk.bf16.mxu0 %vm466_vm0, %v1946_v12  ;;  %v1948_v23 = vld [vmem:[#allocation8 + $0x10] sm:$0xff]   ;;  %v1954_v30 = vld [vmem:[#allocation10] sm:$0xff]  }
  0xc8   :  { %v192_v7 = vrot.slane %v2565_v1, 2  ;;  %1780 = vmatprep.subr.bf16.mxu0 %v1945_v8  ;;  %v1955_v31 = vld [vmem:[#allocation10 + $0x8] sm:$0xff]   ;;  %v1949_v33 = vld [vmem:[#allocation8 + $0x18] sm:$0xff]   ;;  %v1950_v35 = vld [vmem:[#allocation8 + $0x20] sm:$0xff]   ;;  %vm364_vm3 = vcmask 1042432   ;;  %vm366_vm4 = vcmask 1043456  }
  0xc9   :  { %v181_v9 = vmul.f32 %v179_v3, %v2563_v0  ;;  %v184_v10 = vmul.f32 %v182_v4, %v2563_v0  ;;  %v199_v11 = vmul.f32 %v177_v2, %v177_v2  ;;  %v191_v13 = vmul.f32 %v189_v5, %v2563_v0  ;;  %v1951_v38 = vld [vmem:[#allocation8 + $0x28] sm:$0xff]   ;;  %v1952_v41 = vld [vmem:[#allocation8 + $0x30] sm:$0xff]   ;;  %v1953_v53 = vld [vmem:[#allocation8 + $0x38] sm:$0xff]   ;;  %s2358_s10 = smov [#allocation20]  }
  0xca   :  { %v194_v14 = vmul.f32 %v192_v7, %v2563_v0  ;;  %v1956_v57 = vld [vmem:[#allocation7] sm:$0xff]   ;;  %vm368_vm5 = vcmask 1044480   ;;  %vm370_vm6 = vcmask 1045504   ;;  %vm372_vm7 = vcmask 1046528   ;;  %vm2891_vm10 = vmpackc.low %vm466_vm0, %vm466_vm0  ;;  %s1621_s7 = sshll.u32 %s2358_s10, 4  ;;  %s1622_s7 = int_to_ptr.vmem [resolvable:$true] %s1621_s7 }
  0xcb   :  { %v186_v15 = vrot.slane %v184_v10, 1  ;;  %v201_v16 = vrot.slane %v199_v11, 1  ;;  %v204_v17 = vrot.slane %v199_v11, 2  ;;  %1781 = vmatpush3.bf16.msra.mxu0 %v1945_v8  ;;  %vm794_vm8 = vcmask 64512   ;;  %s2306_s17 = scalar_lea.vmem %s1622_s7, 64  ;;  %p2311_p5 = scmp.lt.s32.totalorder %s1622_s7, %s1622_s7 }
  0xcc   :  { %v196_v18 = vrot.slane %v194_v14, 6  ;;  %1798 = vmatprep.subr.bf16.mxu0 %v1954_v30  ;;  %vm2356_vm9 = vmmov 0   ;;  %p2307_p4 = scmp.ne.s32.totalorder %s1622_s7, %s2306_s17  ;;  %p2312_p6 = scmp.lt.s32.totalorder %s2306_s17, %s2306_s17 }
  0xcd   :  { %v188_v20 = vsub.f32 %v181_v9, %v186_v15  ;;  %v203_v21 = vadd.f32 %v201_v16, %v199_v11 }
  0xce   :  { %v198_v22 = vsub.f32 %v191_v13, %v196_v18  ;;  %1783 = vmatmul.mubr.msk.bf16.vlgmr.msra.gmra.mrb[0].mxu0 %vm466_vm0, %v1947_v19  ;;  %p2313_p7 = por %p2312_p6, %p2311_p5 }
  0xcf   :  { %v206_v24 = vadd.f32 %v204_v17, %v203_v21  ;;  %v217_v25 = vmul.f32 %v188_v20, %v188_v20  ;;  %1786 = vmatprep.mubr.msk.bf16.mxu0 %vm466_vm0, %v1948_v23  ;;  %1799 = vmatpush3.bf16.msra.mxu0 %v1954_v30 }
  0xd0   :  { %v218_v26 = vmul.f32 %v198_v22, %v198_v22  ;;  %1800 = vmatprep.subr.bf16.mxu0 %v1955_v31  ;;  %p2314_p8 = pnand %p2313_p7, %p2307_p4 }
  0xd1   :  { %v207_v27 = vadd.f32 3e-30, %v206_v24  ;;  %v224_v28 = vrot.slane %v217_v25, 7  ;;  %v1957_v24 = vld [vmem:[#allocation7 + $0x8] sm:$0xff]  }
  0xd2   :  { %v220_v29 = vrot.slane %v218_v26, 1 }
  0xd3   :  { %1964 = vrsqrt.f32 %v207_v27  ;;  %1801 = vmatpush3.bf16.msra.mxu0 %v1955_v31 }
  0xd4   :  { %v222_v32 = vadd.f32 %v220_v29, %v217_v25  ;;  %v1958_v29 = vld [vmem:[#allocation7 + $0x10] sm:$0xff]  }
  0xd6   :  { %v226_v34 = vadd.f32 %v224_v28, %v222_v32  ;;  %1787 = vmatmul.mubr.msk.bf16.gmra.mrb[4].mxu0 %vm466_vm0, %v1949_v33 }
  0xd7   :  { %1790 = vmatprep.mubr.msk.bf16.mxu0 %vm466_vm0, %v1950_v35 }
  0xd8   :  { %v227_v36 = vadd.f32 3e-30, %v226_v34 }
  0xda   :  { %1966 = vrsqrt.f32 %v227_v36 }
  0xdd   :  { %v1965_v37 = vpop.eup %1964 }
  0xde   :  { %v211_v39 = vrot.slane %v1965_v37, 7  ;;  %v214_v40 = vrot.slane %v1965_v37, 6  ;;  %1791 = vmatmul.mubr.msk.bf16.gmra.mrb[8].mxu0 %vm466_vm0, %v1951_v38  ;;  %v2590_v46 = vmul.f32 %v1965_v37, %v177_v2 }
  0xdf   :  { %1794 = vmatprep.mubr.msk.bf16.mxu0 %vm466_vm0, %v1952_v41 }
  0xe0   :  { %v2582_v42 = vmul.f32 %v211_v39, %v177_v2  ;;  %v2585_v43 = vmul.f32 %v214_v40, %v177_v2  ;;  %v264_v54 = vmul.f32 %v2590_v46, %v2563_v0  ;;  %v312_v56 = vmul.f32 %v2590_v46, %v2565_v1 }
  0xe2   :  { %v265_v44 = vmul.f32 %v2582_v42, %v2563_v0  ;;  %v2594_v47 = vmul.f32 %v2585_v43, %v2563_v0  ;;  %v313_v48 = vmul.f32 %v2582_v42, %v2565_v1  ;;  %v2600_v49 = vmul.f32 %v2585_v43, %v2565_v1 }
  0xe4   :  { %v1967_v45 = vpop.eup %1966  ;;  %v267_v55 = vrot.slane %v265_v44, 1  ;;  %v272_v62 = vrot.slane %v2594_v47, 2  ;;  %v315_v2 = vrot.slane %v313_v48, 1  ;;  %v320_v3 = vrot.slane %v2600_v49, 2 }
  0xe5   :  { %v2602_v50 = vmul.f32 %v1967_v45, %v188_v20  ;;  %v231_v51 = vrot.slane %v1967_v45, 7  ;;  %v234_v52 = vrot.slane %v1967_v45, 1 }
  0xe6   :  { %1795 = vmatmul.mubr.msk.bf16.gmra.mrb[12].mxu0 %vm466_vm0, %v1953_v53  ;;  %v269_v26 = vadd.f32 %v267_v55, %v264_v54  ;;  %v317_v33 = vadd.f32 %v315_v2, %v312_v56 }
  0xe7   :  { %v233_v58 = vmul.f32 %v231_v51, %v198_v22  ;;  %v2608_v59 = vmul.f32 %v234_v52, %v188_v20  ;;  %v247_v60 = vrot.slane %v2602_v50, 7  ;;  %v259_v61 = vmul.f32 %v2602_v50, %v2582_v42  ;;  %1802 = vmatprep.mubr.msk.bf16.mxu0 %vm466_vm0, %v1956_v57 }
  0xe8   :  { %v275_v63 = vrot.slane %v2602_v50, 1  ;;  %v274_v48 = vadd.f32 %v272_v62, %v269_v26  ;;  %v322_v53 = vadd.f32 %v320_v3, %v317_v33 }
  0xe9   :  { %v238_v4 = vrot.slane %v2608_v59, 7  ;;  %v241_v5 = vmul.f32 %v233_v58, %v2585_v43  ;;  %v249_v6 = vmul.f32 %v247_v60, %v2585_v43  ;;  %v250_v7 = vmul.f32 %v2608_v59, %v2590_v46  ;;  %v1959_v60 = vld [vmem:[#allocation7 + $0x18] sm:$0xff]  }
  0xea   :  { %v256_v8 = vrot.slane %v233_v58, 2  ;;  %v261_v9 = vrot.slane %v259_v61, 1  ;;  %v277_v10 = vmul.f32 %v275_v63, %v2563_v0  ;;  %v2623_v11 = vrot.slane %v233_v58, 1  ;;  %v1960_v61 = vld [vmem:[#allocation7 + $0x20] sm:$0xff]  }
  0xeb   :  { %v240_v12 = vmul.f32 %v238_v4, %v2582_v42  ;;  %v243_v13 = vrot.slane %v241_v5, 1  ;;  %v252_v14 = vrot.slane %v250_v7, 6  ;;  %v285_v15 = vrot.slane %v2608_v59, 6 }
  0xec   :  { %v258_v16 = vmul.f32 %v256_v8, %v2590_v46  ;;  %v280_v17 = vmul.f32 %v2623_v11, %v2563_v0  ;;  %v323_v18 = vmul.f32 %v275_v63, %v2565_v1  ;;  %v324_v19 = vmul.f32 %v2623_v11, %v2565_v1 }
  0xed   :  { %v2636_v20 = vsub.f32 %v240_v12, %v243_v13  ;;  %v2638_v21 = vsub.f32 %v249_v6, %v252_v14  ;;  %v287_v22 = vmul.f32 %v285_v15, %v2563_v0  ;;  %v329_v23 = vmul.f32 %v285_v15, %v2565_v1  ;;  %v1962_v12 = vld [vmem:[#allocation7 + $0x30] sm:$0xff]   ;;  %v761_v15 = vld [vmem:[#allocation13] sm:$0xff] }
  0xee   :  { %v263_v25 = vsub.f32 %v258_v16, %v261_v9  ;;  %v282_v27 = vrot.slane %v280_v17, 1  ;;  %v326_v28 = vrot.slane %v324_v19, 1  ;;  %1803 = vmatmul.mubr.msk.bf16.vlgmr.msra.gmra.mrb[0].mxu0 %vm466_vm0, %v1957_v24  ;;  %v352_v2 = vrot.slane %v322_v53, 5  ;;  %v1961_v9 = vld [vmem:[#allocation7 + $0x28] sm:$0xff]   ;;  %1818 = vmatprep.subr.mxu1 %v761_v15  ;;  %v1963_v16 = vld [vmem:[#allocation7 + $0x38] sm:$0xff]  }
  0xef   :  { %v289_v30 = vrot.slane %v287_v22, 2  ;;  %v293_v31 = vrot.slane %v2636_v20, 1  ;;  %v297_v32 = vrot.slane %v2638_v21, 1  ;;  %v331_v37 = vrot.slane %v329_v23, 2  ;;  %1806 = vmatprep.mubr.msk.bf16.mxu0 %vm466_vm0, %v1958_v29  ;;  %1819 = vmatpush3.msra.mxu1 %v761_v15 }
  0xf0   :  { %v284_v34 = vadd.f32 %v282_v27, %v277_v10  ;;  %v2644_v35 = vrot.slane %v263_v25, 6  ;;  %v328_v36 = vadd.f32 %v326_v28, %v323_v18 }
  0xf1   :  { %v295_v38 = vmul.f32 %v293_v31, %v2563_v0  ;;  %v299_v39 = vmul.f32 %v297_v32, %v2563_v0  ;;  %v334_v40 = vmul.f32 %v293_v31, %v2565_v1  ;;  %v335_v41 = vmul.f32 %v297_v32, %v2565_v1 }
  0xf2   :  { %v291_v44 = vadd.f32 %v289_v30, %v284_v34  ;;  %v307_v45 = vmul.f32 %v2644_v35, %v2563_v0  ;;  %v340_v47 = vmul.f32 %v2644_v35, %v2565_v1  ;;  %v333_v57 = vadd.f32 %v331_v37, %v328_v36 }
  0xf3   :  { %v301_v49 = vrot.slane %v299_v39, 1  ;;  %v337_v51 = vrot.slane %v335_v41, 1 }
  0xf4   :  { %v309_v52 = vrot.slane %v307_v45, 2  ;;  %v342_v54 = vrot.slane %v340_v47, 2  ;;  %v346_v55 = vrot.slane %v291_v44, 7  ;;  %v355_v62 = vrot.slane %v333_v57, 4  ;;  %v2693_v57 = vld [vmem:[#allocation14] ss:$0 sm:$0xff] }
  0xf5   :  { %v303_v56 = vadd.f32 %v301_v49, %v295_v38  ;;  %v339_v58 = vadd.f32 %v337_v51, %v334_v40 }
  0xf6   :  { %v361_v1 = vsel %vm360_vm1, %v274_v48, %v346_v55  ;;  %1807 = vmatmul.mubr.msk.bf16.gmra.mrb[4].mxu0 %vm466_vm0, %v1959_v60 }
  0xf7   :  { %v311_v63 = vadd.f32 %v309_v52, %v303_v56  ;;  %v344_v0 = vadd.f32 %v342_v54, %v339_v58  ;;  %1810 = vmatprep.mubr.msk.bf16.mxu0 %vm466_vm0, %v1960_v61 }
  0xf9   :  { %v349_v5 = vrot.slane %v311_v63, 6  ;;  %v358_v3 = vrot.slane %v344_v0, 3 }
  0xfb   :  { %v363_v6 = vsel %vm362_vm2, %v361_v1, %v349_v5 }
  0xfc   :  { %v365_v7 = vsel %vm364_vm3, %v363_v6, %v352_v2 }
  0xfd   :  { %v367_v8 = vsel %vm366_vm4, %v365_v7, %v355_v62 }
  0xfe   :  { %v369_v10 = vsel %vm368_vm5, %v367_v8, %v358_v3  ;;  %1811 = vmatmul.mubr.msk.bf16.gmra.mrb[8].mxu0 %vm466_vm0, %v1961_v9 }
  0xff   :  { %v371_v13 = vsel %vm370_vm6, %v369_v10, 0.0  ;;  %1814 = vmatprep.mubr.msk.bf16.mxu0 %vm466_vm0, %v1962_v12 }
 0x100   :  { %v373_v14 = vsel %vm372_vm7, %v371_v13, 0.0 }
 0x101   :  { %762 = vxpose.xlu0.b32.start.end [1/1] (short) %v373_v14, 128 }
 0x106   :  { %1815 = vmatmul.mubr.msk.bf16.gmra.mrb[12].mxu0 %vm466_vm0, %v1963_v16 }
 0x181   :  { %v778_v17 = vpop.trf.xlu0 }
 0x182   :  { %1820 = vmatprep.mubr.msk.f32.mxu1 %vm794_vm8, %v778_v17 }
 0x185   :  { %v779_v18 = vpop.trf.xlu0 }
 0x186   :  { %1821 = vmatmul.mubr.msk.f32.vlgmr.msra.gmra.mrb[0].mxu1 %vm794_vm8, %v779_v18 }
 0x189   :  { %v780_v19 = vpop.trf.xlu0 }
 0x18a   :  { %1823 = vmatprep.mubr.msk.f32.mxu1 %vm794_vm8, %v780_v19 }
 0x18d   :  { %v781_v22 = vpop.trf.xlu0 }
 0x18e   :  { %1824 = vmatmul.mubr.msk.f32.gmra.mrb[2].mxu1 %vm794_vm8, %v781_v22 }
 0x191   :  { %v782_v23 = vpop.trf.xlu0 }
 0x192   :  { %1826 = vmatprep.mubr.msk.f32.mxu1 %vm794_vm8, %v782_v23 }
 0x195   :  { %v783_v24 = vpop.trf.xlu0 }
 0x196   :  { %1827 = vmatmul.mubr.msk.f32.gmra.mrb[4].mxu1 %vm794_vm8, %v783_v24 }
 0x199   :  { %v784_v25 = vpop.trf.xlu0 }
 0x19a   :  { %1829 = vmatprep.mubr.msk.f32.mxu1 %vm794_vm8, %v784_v25 }
 0x19d   :  { %v785_v26 = vpop.trf.xlu0 }
 0x19e   :  { %1830 = vmatmul.mubr.msk.f32.gmra.mrb[6].mxu1 %vm794_vm8, %v785_v26 }
 0x1a1   :  { %v786_v27 = vpop.trf.xlu0 }
 0x1a2   :  { %1832 = vmatprep.mubr.msk.f32.mxu1 %vm794_vm8, %v786_v27 }
 0x1a5   :  { %v787_v28 = vpop.trf.xlu0 }
 0x1a6   :  { %1833 = vmatmul.mubr.msk.f32.gmra.mrb[8].mxu1 %vm794_vm8, %v787_v28 }
 0x1a9   :  { %v788_v29 = vpop.trf.xlu0 }
 0x1aa   :  { %1835 = vmatprep.mubr.msk.f32.mxu1 %vm794_vm8, %v788_v29 }
 0x1ad   :  { %v789_v30 = vpop.trf.xlu0 }
 0x1ae   :  { %1836 = vmatmul.mubr.msk.f32.gmra.mrb[10].mxu1 %vm794_vm8, %v789_v30 }
 0x1b1   :  { %v790_v31 = vpop.trf.xlu0 }
 0x1b2   :  { %1838 = vmatprep.mubr.msk.f32.mxu1 %vm794_vm8, %v790_v31 }
 0x1b5   :  { %v791_v32 = vpop.trf.xlu0 }
 0x1b6   :  { %1839 = vmatmul.mubr.msk.f32.gmra.mrb[12].mxu1 %vm794_vm8, %v791_v32 }
 0x1b9   :  { %v792_v33 = vpop.trf.xlu0 }
 0x1ba   :  { %1841 = vmatprep.mubr.msk.f32.mxu1 %vm794_vm8, %v792_v33 }
 0x1bd   :  { %v793_v34 = vpop.trf.xlu0 }
 0x1be   :  { %1842 = vmatmul.mubr.msk.f32.gmra.mrb[14].mxu1 %vm794_vm8, %v793_v34 }
 0x1c1   :  { %v1804_v36 = vpop.f32.mrb[0].mxu0 }
 0x1c2   :  { %v698_v37 = vpop.f32.mrb[1].mxu0 }
 0x1c3   :  { %v1805_v38 = vpop.f32.mrb[2].mxu0 }
 0x1c4   :  { %v701_v39 = vpop.f32.mrb[3].mxu0 }
 0x1c9   :  { %v1808_v40 = vpop.f32.mrb[4].mxu0 }
 0x1ca   :  { %v714_v41 = vpop.f32.mrb[5].mxu0 }
 0x1cb   :  { %v1809_v44 = vpop.f32.mrb[6].mxu0 }
 0x1cc   :  { %v717_v45 = vpop.f32.mrb[7].mxu0 }
 0x1d1   :  { %v2679_v47 = vpop.f32.mrb[8].mxu0 }
 0x1d2   :  { %v2681_v48 = vpop.f32.mrb[9].mxu0 }
 0x1d3   :  { %v2683_v49 = vpop.f32.mrb[10].mxu0 }
 0x1d4   :  { %v733_v51 = vpop.f32.mrb[11].mxu0 }
 0x1d9   :  { %v2685_v52 = vpop.f32.mrb[12].mxu0 }
 0x1da   :  { %v2687_v53 = vpop.f32.mrb[13].mxu0 }
 0x1db   :  { %v2689_v54 = vpop.f32.mrb[14].mxu0 }
 0x1dc   :  { %v2691_v55 = vpop.f32.mrb[15].mxu0 }
 0x259   :  { %v1822_v56 = vpop.f32.mrb[0].mxu1 }
 0x25a   :  { %v989_v58 = vadd.f32 %v1822_v56, %v701_v39  ;;  %v909_v60 = vpop.f32.mrb[1].mxu1 }
 0x25b   :  { %v988_v61 = vadd.f32 %v909_v60, %v698_v37 }
 0x25c   :  { %v1012_v63 = vadd.f32 %v2693_v57, %v989_v58 }
 0x25d   :  { %v1011_v0 = vadd.f32 %v2693_v57, %v988_v61 }
 0x25e   :  { %v1689_v2 = vmul.f32 -1.442695, %v1012_v63 }
 0x25f   :  { %v1688_v1 = vmul.f32 -1.442695, %v1011_v0 }
 0x260   :  { %1968 = vpow2.f32 %v1689_v2 }
 0x261   :  { %1970 = vpow2.f32 %v1688_v1  ;;  %v1825_v5 = vpop.f32.mrb[2].mxu1 }
 0x262   :  { %v991_v62 = vadd.f32 %v1825_v5, %v1805_v38  ;;  %v919_v3 = vpop.f32.mrb[3].mxu1 }
 0x263   :  { %v990_v6 = vadd.f32 %v1804_v36, %v919_v3 }
 0x264   :  { %v1014_v7 = vadd.f32 %v2693_v57, %v991_v62 }
 0x265   :  { %v2699_v8 = vadd.f32 %v2693_v57, %v990_v6 }
 0x266   :  { %v1691_v9 = vmul.f32 -1.442695, %v1014_v7 }
 0x267   :  { %v1690_v10 = vmul.f32 -1.442695, %v2699_v8 }
 0x268   :  { %1972 = vpow2.f32 %v1691_v9 }
 0x269   :  { %1974 = vpow2.f32 %v1690_v10  ;;  %v1828_v12 = vpop.f32.mrb[4].mxu1 }
 0x26a   :  { %v1969_v13 = vpop.eup %1968  ;;  %v993_v14 = vadd.f32 %v1828_v12, %v717_v45  ;;  %v929_v15 = vpop.f32.mrb[5].mxu1 }
 0x26b   :  { %v1971_v16 = vpop.eup %1970  ;;  %v1076_v17 = vadd.f32 1.0, %v1969_v13  ;;  %v992_v18 = vadd.f32 %v929_v15, %v714_v41 }
 0x26c   :  { %v1075_v19 = vadd.f32 1.0, %v1971_v16  ;;  %v2703_v22 = vadd.f32 %v2693_v57, %v993_v14 }
 0x26d   :  { %1976 = vrcp.f32 %v1076_v17  ;;  %v2707_v24 = vadd.f32 %v2693_v57, %v992_v18 }
 0x26e   :  { %1978 = vrcp.f32 %v1075_v19  ;;  %v1693_v23 = vmul.f32 -1.442695, %v2703_v22 }
 0x26f   :  { %v1692_v32 = vmul.f32 -1.442695, %v2707_v24 }
 0x270   :  { %1980 = vpow2.f32 %v1693_v23 }
 0x271   :  { %v1831_v25 = vpop.f32.mrb[6].mxu1 }
 0x272   :  { %v1973_v26 = vpop.eup %1972  ;;  %v995_v27 = vadd.f32 %v1831_v25, %v1809_v44  ;;  %v939_v28 = vpop.f32.mrb[7].mxu1 }
 0x273   :  { %v1975_v29 = vpop.eup %1974  ;;  %v1078_v30 = vadd.f32 1.0, %v1973_v26  ;;  %v994_v31 = vadd.f32 %v1808_v40, %v939_v28 }
 0x274   :  { %v1077_v33 = vadd.f32 1.0, %v1975_v29  ;;  %v2722_v60 = vadd.f32 %v2693_v57, %v995_v27 }
 0x275   :  { %1982 = vrcp.f32 %v1078_v30  ;;  %v2732_v1 = vadd.f32 %v2693_v57, %v994_v31 }
 0x276   :  { %1984 = vpow2.f32 %v1692_v32 }
 0x277   :  { %v1977_v34 = vpop.eup %1976  ;;  %1986 = vrcp.f32 %v1077_v33  ;;  %v1694_v15 = vmul.f32 -1.442695, %v2732_v1 }
 0x278   :  { %v1979_v36 = vpop.eup %1978  ;;  %v2710_v37 = vmul.f32 %v1977_v34, %v1012_v63 }
 0x279   :  { %v2712_v38 = vmul.f32 %v1979_v36, %v1011_v0  ;;  %v1834_v39 = vpop.f32.mrb[8].mxu1 }
 0x27a   :  { %v997_v41 = vadd.f32 %v1834_v39, %v733_v51  ;;  %v949_v44 = vpop.f32.mrb[9].mxu1  ;;  %v1142_v45 = vsel %vm466_vm0, %v2710_v37, 0.0  ;;  %v1188_v40 = vmul.f32 %v2710_v37, %v2710_v37  ;;  %v1981_v51 = vpop.eup %1980 }
 0x27b   :  { %v996_v56 = vadd.f32 %v949_v44, %v2681_v48  ;;  %1143 = vadd.xlane.f32.xlu1 %v1142_v45  ;;  %v1139_v58 = vsel %vm466_vm0, %v2712_v38, 0.0  ;;  %v1187_v0 = vmul.f32 %v2712_v38, %v2712_v38  ;;  %v1695_v48 = vmul.f32 -1.442695, %v2722_v60 }
 0x27c   :  { %1140 = vadd.xlane.f32.xlu0 %v1139_v58  ;;  %v1206_v63 = vsel %vm466_vm0, %v1188_v40, 0.0  ;;  %v1080_v5 = vadd.f32 1.0, %v1981_v51  ;;  %v2757_v27 = vadd.f32 %v2693_v57, %v997_v41 }
 0x27d   :  { %v2725_v61 = vadd.f32 %v2693_v57, %v996_v56  ;;  %v1203_v12 = vsel %vm466_vm0, %v1187_v0, 0.0  ;;  %1988 = vpow2.f32 %v1695_v48 }
 0x27e   :  { %1990 = vrcp.f32 %v1080_v5  ;;  %v1697_v33 = vmul.f32 -1.442695, %v2757_v27 }
 0x27f   :  { %v1983_v2 = vpop.eup %1982  ;;  %1207 = vadd.xlane.f32.xlu1 %v1206_v63  ;;  %1992 = vpow2.f32 %v1694_v15  ;;  %v1696_v56 = vmul.f32 -1.442695, %v2725_v61 }
 0x280   :  { %v1985_v3 = vpop.eup %1984  ;;  %v2734_v6 = vmul.f32 %v1983_v2, %v1014_v7 }
 0x281   :  { %v1837_v62 = vpop.f32.mrb[10].mxu1  ;;  %v1987_v13 = vpop.eup %1986  ;;  %v1079_v17 = vadd.f32 1.0, %v1985_v3 }
 0x282   :  { %v999_v9 = vadd.f32 %v1837_v62, %v2683_v49  ;;  %v959_v10 = vpop.f32.mrb[11].mxu1  ;;  %v2747_v49 = vmul.f32 %v1987_v13, %v2699_v8  ;;  %v1148_v18 = vsel %vm466_vm0, %v2734_v6, 0.0  ;;  %v1190_v26 = vmul.f32 %v2734_v6, %v2734_v6 }
 0x283   :  { %v998_v14 = vadd.f32 %v2679_v47, %v959_v10  ;;  %1204 = vadd.xlane.f32.xlu1 %v1203_v12  ;;  %1994 = vrcp.f32 %v1079_v17 }
 0x284   :  { %v2741_v16 = vadd.f32 %v2693_v57, %v999_v9  ;;  %v1145_v25 = vsel %vm466_vm0, %v2747_v49, 0.0  ;;  %v1212_v30 = vsel %vm466_vm0, %v1190_v26, 0.0  ;;  %v1189_v31 = vmul.f32 %v2747_v49, %v2747_v49 }
 0x285   :  { %v2744_v7 = vadd.f32 %v2693_v57, %v998_v14  ;;  %1996 = vpow2.f32 %v1697_v33  ;;  %v2355_v26 = vmov 0.0|0.0  }
 0x286   :  { %v1209_v45 = vsel %vm466_vm0, %v1189_v31, 0.0  ;;  %v1699_v3 = vmul.f32 -1.442695, %v2741_v16  ;;  %1879 = vmatprep.subr.bf16.mxu1 %v2355_v26 }
 0x287   :  { %1149 = vadd.xlane.f32.xlu1 %v1148_v18  ;;  %v1698_v18 = vmul.f32 -1.442695, %v2744_v7 }
 0x289   :  { %v1840_v47 = vpop.f32.mrb[12].mxu1 }
 0x28a   :  { %v1001_v19 = vadd.f32 %v1840_v47, %v2691_v55  ;;  %v969_v23 = vpop.f32.mrb[13].mxu1  ;;  %v1989_v55 = vpop.eup %1988 }
 0x28b   :  { %v1000_v8 = vadd.f32 %v969_v23, %v2687_v53  ;;  %1146 = vadd.xlane.f32.xlu1 %v1145_v25  ;;  %v1991_v32 = vpop.eup %1990  ;;  %v1082_v34 = vadd.f32 1.0, %v1989_v55 }
 0x28c   :  { %v2761_v28 = vadd.f32 %v2693_v57, %v1001_v19  ;;  %v1993_v53 = vpop.eup %1992  ;;  %v2771_v39 = vmul.f32 %v1991_v32, %v2703_v22 }
 0x28d   :  { %v2764_v29 = vadd.f32 %v2693_v57, %v1000_v8  ;;  %v1995_v40 = vpop.eup %1994  ;;  %1998 = vrcp.f32 %v1082_v34  ;;  %v1081_v63 = vadd.f32 1.0, %v1993_v53 }
 0x28e   :  { %v2782_v22 = vmul.f32 %v1995_v40, %v2707_v24  ;;  %v1154_v2 = vsel %vm466_vm0, %v2771_v39, 0.0  ;;  %2000 = vpow2.f32 %v1696_v56  ;;  %v1192_v48 = vmul.f32 %v2771_v39, %v2771_v39 }
 0x28f   :  { %1213 = vadd.xlane.f32.xlu1 %v1212_v30  ;;  %v1701_v32 = vmul.f32 -1.442695, %v2761_v28  ;;  %v1700_v56 = vmul.f32 -1.442695, %v2764_v29 }
 0x290   :  { %v1218_v5 = vsel %vm466_vm0, %v1192_v48, 0.0  ;;  %v1191_v24 = vmul.f32 %v2782_v22, %v2782_v22 }
 0x291   :  { %v1843_v36 = vpop.f32.mrb[14].mxu1 }
 0x292   :  { %v1003_v41 = vadd.f32 %v1843_v36, %v2689_v54  ;;  %v979_v44 = vpop.f32.mrb[15].mxu1  ;;  %v1215_v14 = vsel %vm466_vm0, %v1191_v24, 0.0 }
 0x293   :  { %v1002_v58 = vadd.f32 %v2685_v52, %v979_v44  ;;  %1210 = vadd.xlane.f32.xlu1 %v1209_v45  ;;  %v1151_v52 = vsel %vm466_vm0, %v2782_v22, 0.0 }
 0x294   :  { %v1026_v51 = vadd.f32 %v2693_v57, %v1003_v41 }
 0x295   :  { %v2779_v0 = vadd.f32 %v2693_v57, %v1002_v58  ;;  %v1997_v57 = vpop.eup %1996 }
 0x296   :  { %v1703_v54 = vmul.f32 -1.442695, %v1026_v51  ;;  %v1084_v9 = vadd.f32 1.0, %v1997_v57 }
 0x297   :  { %1155 = vadd.xlane.f32.xlu1 %v1154_v2  ;;  %v1999_v62 = vpop.eup %1998 }
 0x298   :  { %2002 = vpow2.f32 %v1703_v54  ;;  %v2001_v10 = vpop.eup %2000  ;;  %v2795_v13 = vmul.f32 %v1999_v62, %v2722_v60 }
 0x299   :  { %2004 = vrcp.f32 %v1081_v63  ;;  %v1083_v47 = vadd.f32 1.0, %v2001_v10 }
 0x29a   :  { %2006 = vpow2.f32 %v1699_v3  ;;  %v1160_v23 = vsel %vm466_vm0, %v2795_v13, 0.0  ;;  %v1194_v25 = vmul.f32 %v2795_v13, %v2795_v13 }
 0x29b   :  { %1152 = vadd.xlane.f32.xlu1 %v1151_v52  ;;  %2008 = vrcp.f32 %v1084_v9 }
 0x29f   :  { %1219 = vadd.xlane.f32.xlu1 %v1218_v5  ;;  %v1702_v5 = vmul.f32 -1.442695, %v2779_v0 }
 0x2a2   :  { %v2003_v12 = vpop.eup %2002 }
 0x2a3   :  { %v2005_v15 = vpop.eup %2004  ;;  %v1090_v17 = vadd.f32 1.0, %v2003_v12  ;;  %1216 = vadd.xlane.f32.xlu1 %v1215_v14 }
 0x2a4   :  { %v2800_v19 = vmul.f32 %v2005_v15, %v2732_v1  ;;  %v2007_v8 = vpop.eup %2006  ;;  %v1224_v1 = vsel %vm466_vm0, %v1194_v25, 0.0 }
 0x2a5   :  { %2010 = vrcp.f32 %v1090_v17  ;;  %v2009_v55 = vpop.eup %2008  ;;  %v1086_v34 = vadd.f32 1.0, %v2007_v8 }
 0x2a6   :  { %2012 = vpow2.f32 %v1698_v18  ;;  %v1157_v60 = vsel %vm466_vm0, %v2800_v19, 0.0  ;;  %v1193_v30 = vmul.f32 %v2800_v19, %v2800_v19  ;;  %v2816_v53 = vmul.f32 %v2009_v55, %v2757_v27 }
 0x2a7   :  { %1161 = vadd.xlane.f32.xlu1 %v1160_v23  ;;  %2014 = vrcp.f32 %v1083_v47 }
 0x2a8   :  { %v1221_v41 = vsel %vm466_vm0, %v1193_v30, 0.0  ;;  %2016 = vpow2.f32 %v1701_v32  ;;  %v1166_v27 = vsel %vm466_vm0, %v2816_v53, 0.0  ;;  %v1196_v2 = vmul.f32 %v2816_v53, %v2816_v53 }
 0x2a9   :  { %2018 = vrcp.f32 %v1086_v34 }
 0x2aa   :  { %2020 = vpow2.f32 %v1700_v56 }
 0x2ab   :  { %1158 = vadd.xlane.f32.xlu1 %v1157_v60 }
 0x2af   :  { %v2011_v31 = vpop.eup %2010  ;;  %1225 = vadd.xlane.f32.xlu1 %v1224_v1 }
 0x2b0   :  { %v2813_v33 = vmul.f32 %v2011_v31, %v1026_v51  ;;  %v2013_v36 = vpop.eup %2012 }
 0x2b1   :  { %v2015_v40 = vpop.eup %2014  ;;  %v1085_v58 = vadd.f32 1.0, %v2013_v36 }
 0x2b2   :  { %v1184_v44 = vsel %vm466_vm0, %v2813_v33, 0.0  ;;  %v1202_v45 = vmul.f32 %v2813_v33, %v2813_v33  ;;  %v2825_v51 = vmul.f32 %v2015_v40, %v2725_v61  ;;  %v2017_v52 = vpop.eup %2016  ;;  %v1230_v61 = vsel %vm466_vm0, %v1196_v2, 0.0 }
 0x2b3   :  { %1222 = vadd.xlane.f32.xlu1 %v1221_v41  ;;  %1185 = vadd.xlane.f32.xlu0 %v1184_v44  ;;  %2022 = vrcp.f32 %v1085_v58  ;;  %v2019_v57 = vpop.eup %2018  ;;  %v1088_v24 = vadd.f32 1.0, %v2017_v52 }
 0x2b4   :  { %v1248_v63 = vsel %vm466_vm0, %v1202_v45, 0.0  ;;  %v1163_v54 = vsel %vm466_vm0, %v2825_v51, 0.0  ;;  %v1195_v48 = vmul.f32 %v2825_v51, %v2825_v51  ;;  %v2021_v62 = vpop.eup %2020  ;;  %v2839_v3 = vmul.f32 %v2019_v57, %v2741_v16 }
 0x2b5   :  { %2024 = vpow2.f32 %v1702_v5  ;;  %v1087_v12 = vadd.f32 1.0, %v2021_v62 }
 0x2b6   :  { %v1227_v9 = vsel %vm466_vm0, %v1195_v48, 0.0  ;;  %2026 = vrcp.f32 %v1088_v24  ;;  %v1172_v15 = vsel %vm466_vm0, %v2839_v3, 0.0  ;;  %v1198_v16 = vmul.f32 %v2839_v3, %v2839_v3 }
 0x2b7   :  { %1167 = vadd.xlane.f32.xlu1 %v1166_v27  ;;  %1249 = vadd.xlane.f32.xlu0 %v1248_v63  ;;  %2028 = vrcp.f32 %v1087_v12  ;;  %v2357_v12 = vmov 0.0  }
 0x2b8   :  { %v1236_v47 = vsel %vm466_vm0, %v1198_v16, 0.0  ;;  %1876 = vmatprep.mubr.msk.f32.mxu1 %vm2356_vm9, %v2357_v12 }
 0x2bb   :  { %1164 = vadd.xlane.f32.xlu1 %v1163_v54 }
 0x2bd   :  { %v2023_v10 = vpop.eup %2022 }
 0x2be   :  { %v2843_v14 = vmul.f32 %v2023_v10, %v2744_v7 }
 0x2bf   :  { %1231 = vadd.xlane.f32.xlu1 %v1230_v61  ;;  %v2025_v18 = vpop.eup %2024 }
 0x2c0   :  { %v1169_v17 = vsel %vm466_vm0, %v2843_v14, 0.0  ;;  %v1197_v23 = vmul.f32 %v2843_v14, %v2843_v14  ;;  %v2027_v7 = vpop.eup %2026  ;;  %v1089_v60 = vadd.f32 1.0, %v2025_v18 }
 0x2c1   :  { %v2855_v25 = vmul.f32 %v2027_v7, %v2761_v28  ;;  %v2029_v55 = vpop.eup %2028 }
 0x2c2   :  { %v1233_v8 = vsel %vm466_vm0, %v1197_v23, 0.0  ;;  %2030 = vrcp.f32 %v1089_v60  ;;  %v2859_v1 = vmul.f32 %v2029_v55, %v2764_v29 }
 0x2c3   :  { %1228 = vadd.xlane.f32.xlu1 %v1227_v9  ;;  %v1178_v30 = vsel %vm466_vm0, %v2855_v25, 0.0  ;;  %v1200_v32 = vmul.f32 %v2855_v25, %v2855_v25 }
 0x2c4   :  { %v1175_v31 = vsel %vm466_vm0, %v2859_v1, 0.0  ;;  %v1199_v34 = vmul.f32 %v2859_v1, %v2859_v1 }
 0x2c5   :  { %v1242_v28 = vsel %vm466_vm0, %v1200_v32, 0.0 }
 0x2c6   :  { %v1239_v41 = vsel %vm466_vm0, %v1199_v34, 0.0 }
 0x2c7   :  { %1173 = vadd.xlane.f32.xlu1 %v1172_v15 }
 0x2cb   :  { %1170 = vadd.xlane.f32.xlu1 %v1169_v17 }
 0x2cc   :  { %v2031_v36 = vpop.eup %2030 }
 0x2cd   :  { %v2871_v29 = vmul.f32 %v2031_v36, %v2779_v0  ;;  %v2880_v36 = vld [vmem:[#allocation16] ss:$0 sm:$0xff] }
 0x2cf   :  { %1237 = vadd.xlane.f32.xlu1 %v1236_v47  ;;  %v1181_v44 = vsel %vm466_vm0, %v2871_v29, 0.0  ;;  %v1201_v45 = vmul.f32 %v2871_v29, %v2871_v29 }
 0x2d1   :  { %v1245_v40 = vsel %vm466_vm0, %v1201_v45, 0.0 }
 0x2d3   :  { %1234 = vadd.xlane.f32.xlu1 %v1233_v8 }
 0x2d7   :  { %1179 = vadd.xlane.f32.xlu1 %v1178_v30 }
 0x2db   :  { %1176 = vadd.xlane.f32.xlu1 %v1175_v31 }
 0x2df   :  { %1243 = vadd.xlane.f32.xlu1 %v1242_v28 }
 0x2e3   :  { %1240 = vadd.xlane.f32.xlu1 %v1239_v41 }
 0x2e7   :  { %1182 = vadd.xlane.f32.xlu1 %v1181_v44 }
 0x2eb   :  { %1246 = vadd.xlane.f32.xlu1 %v1245_v40 }
 0x308   :  { %v1144_v56 = vpop.xlane.xlu1 %1143 }
 0x309   :  { %v1252_v58 = vmul.f32 0.03125, %v1144_v56  ;;  %v1141_v27 = vpop.xlane.xlu0 %1140 }
 0x30a   :  { %v1251_v0 = vmul.f32 0.03125, %v1141_v27 }
 0x30b   :  { %v1284_v54 = vmul.f32 %v1252_v58, %v1252_v58  ;;  %v1332_v60 = vsub.f32 %v2710_v37, %v1252_v58  ;;  %v2884_v58 = vld [vmem:[#allocation17] ss:$0 sm:$0xff] }
 0x30c   :  { %v1208_v63 = vpop.xlane.xlu1 %1207  ;;  %v1283_v48 = vmul.f32 %v1251_v0, %v1251_v0  ;;  %v1331_v41 = vsub.f32 %v2712_v38, %v1251_v0 }
 0x30d   :  { %v1268_v2 = vmul.f32 0.03125, %v1208_v63 }
 0x30f   :  { %v1300_v52 = vsub.f32 %v1268_v2, %v1284_v54 }
 0x310   :  { %v1205_v61 = vpop.xlane.xlu1 %1204 }
 0x311   :  { %v1316_v57 = vmax.f32 %v1300_v52, 0.0  ;;  %v1267_v5 = vmul.f32 0.03125, %v1205_v61 }
 0x313   :  { %v1348_v24 = vadd.f32 1e-05, %v1316_v57  ;;  %v1299_v62 = vsub.f32 %v1267_v5, %v1283_v48 }
 0x314   :  { %v1150_v9 = vpop.xlane.xlu1 %1149 }
 0x315   :  { %2032 = vrsqrt.f32 %v1348_v24  ;;  %v1315_v10 = vmax.f32 %v1299_v62, 0.0  ;;  %v1254_v16 = vmul.f32 0.03125, %v1150_v9 }
 0x317   :  { %v1347_v15 = vadd.f32 1e-05, %v1315_v10  ;;  %v1286_v47 = vmul.f32 %v1254_v16, %v1254_v16  ;;  %v1334_v10 = vsub.f32 %v2734_v6, %v1254_v16 }
 0x318   :  { %v1147_v17 = vpop.xlane.xlu1 %1146 }
 0x319   :  { %2034 = vrsqrt.f32 %v1347_v15  ;;  %v1253_v23 = vmul.f32 0.03125, %v1147_v17 }
 0x31b   :  { %v1285_v32 = vmul.f32 %v1253_v23, %v1253_v23 }
 0x31c   :  { %v1214_v18 = vpop.xlane.xlu1 %1213 }
 0x31d   :  { %v1270_v7 = vmul.f32 0.03125, %v1214_v18 }
 0x31f   :  { %v2033_v8 = vpop.eup %2032  ;;  %v1302_v55 = vsub.f32 %v1270_v7, %v1286_v47 }
 0x320   :  { %v1380_v30 = vmul.f32 %v2033_v8, %v1332_v60  ;;  %v1211_v31 = vpop.xlane.xlu1 %1210  ;;  %v1333_v8 = vsub.f32 %v2747_v49, %v1253_v23 }
 0x321   :  { %v1318_v28 = vmax.f32 %v1302_v55, 0.0  ;;  %v1269_v34 = vmul.f32 0.03125, %v1211_v31 }
 0x322   :  { %v1403_v63 = vmul.f32 %v2880_v36, %v1380_v30 }
 0x323   :  { %v2035_v44 = vpop.eup %2034  ;;  %v1350_v45 = vadd.f32 1e-05, %v1318_v28  ;;  %v1301_v40 = vsub.f32 %v1269_v34, %v1285_v32 }
 0x324   :  { %v1379_v56 = vmul.f32 %v2035_v44, %v1331_v41  ;;  %v1156_v27 = vpop.xlane.xlu1 %1155  ;;  %v1426_v48 = vadd.f32 %v2884_v58, %v1403_v63 }
 0x325   :  { %2036 = vrsqrt.f32 %v1350_v45  ;;  %v1317_v37 = vmax.f32 %v1301_v40, 0.0  ;;  %v1256_v38 = vmul.f32 0.03125, %v1156_v27 }
 0x326   :  { %v1402_v54 = vmul.f32 %v2880_v36, %v1379_v56 }
 0x327   :  { %v1349_v2 = vadd.f32 1e-05, %v1317_v37  ;;  %v1288_v24 = vmul.f32 %v1256_v38, %v1256_v38 }
 0x328   :  { %v1153_v52 = vpop.xlane.xlu1 %1152  ;;  %v1425_v61 = vadd.f32 %v2884_v58, %v1402_v54  ;;  %v1336_v54 = vsub.f32 %v2771_v39, %v1256_v38 }
 0x329   :  { %2038 = vrsqrt.f32 %v1349_v2  ;;  %v1255_v62 = vmul.f32 0.03125, %v1153_v52 }
 0x32a   :  { %v1880_v57 = vpack.c.bf16 %v1426_v48, %v1425_v61 }
 0x32b   :  { %v1287_v47 = vmul.f32 %v1255_v62, %v1255_v62 }
 0x32c   :  { %v1220_v5 = vpop.xlane.xlu1 %1219  ;;  %1882 = vmatpush3.bf16.xpose.msk.msra.mxu1 %vm2891_vm10, %v1880_v57 }
 0x32d   :  { %v1272_v9 = vmul.f32 0.03125, %v1220_v5  ;;  %1883 = vmatprep.subr.bf16.mxu1 %v2355_v26 }
 0x32f   :  { %v2037_v12 = vpop.eup %2036  ;;  %v1304_v15 = vsub.f32 %v1272_v9, %v1288_v24  ;;  %v1335_v9 = vsub.f32 %v2782_v22, %v1255_v62 }
 0x330   :  { %v1382_v17 = vmul.f32 %v2037_v12, %v1334_v10  ;;  %v1217_v18 = vpop.xlane.xlu1 %1216 }
 0x331   :  { %v1320_v7 = vmax.f32 %v1304_v15, 0.0  ;;  %v1271_v60 = vmul.f32 0.03125, %v1217_v18 }
 0x332   :  { %v1405_v34 = vmul.f32 %v2880_v36, %v1382_v17 }
 0x333   :  { %v2039_v55 = vpop.eup %2038  ;;  %v1352_v30 = vadd.f32 1e-05, %v1320_v7  ;;  %v1303_v31 = vsub.f32 %v1271_v60, %v1287_v47 }
 0x334   :  { %v1381_v32 = vmul.f32 %v2039_v55, %v1333_v8  ;;  %v1162_v28 = vpop.xlane.xlu1 %1161  ;;  %v1428_v40 = vadd.f32 %v2884_v58, %v1405_v34 }
 0x335   :  { %2040 = vrsqrt.f32 %v1352_v30  ;;  %v1319_v41 = vmax.f32 %v1303_v31, 0.0  ;;  %v1258_v56 = vmul.f32 0.03125, %v1162_v28 }
 0x336   :  { %v1404_v6 = vmul.f32 %v2880_v36, %v1381_v32 }
 0x337   :  { %v1351_v16 = vadd.f32 1e-05, %v1319_v41  ;;  %v1290_v27 = vmul.f32 %v1258_v56, %v1258_v56  ;;  %v1338_v34 = vsub.f32 %v2795_v13, %v1258_v56 }
 0x338   :  { %v1159_v44 = vpop.xlane.xlu1 %1158  ;;  %v1427_v45 = vadd.f32 %v2884_v58, %v1404_v6 }
 0x339   :  { %2042 = vrsqrt.f32 %v1351_v16  ;;  %v1257_v63 = vmul.f32 0.03125, %v1159_v44 }
 0x33a   :  { %v1884_v49 = vpack.c.bf16 %v1428_v40, %v1427_v45 }
 0x33b   :  { %v1289_v57 = vmul.f32 %v1257_v63, %v1257_v63 }
 0x33c   :  { %v1226_v23 = vpop.xlane.xlu1 %1225  ;;  %1886 = vmatpush3.bf16.xpose.msk.msra.mxu1 %vm2891_vm10, %v1884_v49 }
 0x33d   :  { %v1274_v37 = vmul.f32 0.03125, %v1226_v23  ;;  %1887 = vmatprep.subr.bf16.mxu1 %v2355_v26  ;;  %v1337_v23 = vsub.f32 %v2800_v19, %v1257_v63 }
 0x33f   :  { %v2041_v2 = vpop.eup %2040  ;;  %v1306_v52 = vsub.f32 %v1274_v37, %v1290_v27 }
 0x340   :  { %v1384_v61 = vmul.f32 %v2041_v2, %v1336_v54  ;;  %v1223_v48 = vpop.xlane.xlu1 %1222 }
 0x341   :  { %v1322_v5 = vmax.f32 %v1306_v52, 0.0  ;;  %v1273_v24 = vmul.f32 0.03125, %v1223_v48 }
 0x342   :  { %v1407_v47 = vmul.f32 %v2880_v36, %v1384_v61 }
 0x343   :  { %v2043_v10 = vpop.eup %2042  ;;  %v1354_v12 = vadd.f32 1e-05, %v1322_v5  ;;  %v1305_v15 = vsub.f32 %v1273_v24, %v1289_v57 }
 0x344   :  { %v1383_v17 = vmul.f32 %v2043_v10, %v1335_v9  ;;  %v1168_v18 = vpop.xlane.xlu1 %1167  ;;  %v1430_v55 = vadd.f32 %v2884_v58, %v1407_v47 }
 0x345   :  { %2044 = vrsqrt.f32 %v1354_v12  ;;  %v1321_v7 = vmax.f32 %v1305_v15, 0.0  ;;  %v1260_v30 = vmul.f32 0.03125, %v1168_v18 }
 0x346   :  { %v1406_v39 = vmul.f32 %v2880_v36, %v1383_v17 }
 0x347   :  { %v1353_v38 = vadd.f32 1e-05, %v1321_v7  ;;  %v1292_v31 = vmul.f32 %v1260_v30, %v1260_v30  ;;  %v1340_v17 = vsub.f32 %v2816_v53, %v1260_v30 }
 0x348   :  { %v1165_v60 = vpop.xlane.xlu1 %1164  ;;  %v1429_v8 = vadd.f32 %v2884_v58, %v1406_v39 }
 0x349   :  { %2046 = vrsqrt.f32 %v1353_v38  ;;  %v1259_v32 = vmul.f32 0.03125, %v1165_v60 }
 0x34a   :  { %v1888_v22 = vpack.c.bf16 %v1430_v55, %v1429_v8  ;;  %v1186_v55 = vpop.xlane.xlu0 %1185 }
 0x34b   :  { %v1291_v45 = vmul.f32 %v1259_v32, %v1259_v32 }
 0x34c   :  { %v1232_v62 = vpop.xlane.xlu1 %1231  ;;  %1890 = vmatpush3.bf16.xpose.msk.msra.mxu1 %vm2891_vm10, %v1888_v22  ;;  %v1339_v22 = vsub.f32 %v2825_v51, %v1259_v32 }
 0x34d   :  { %v1276_v28 = vmul.f32 0.03125, %v1232_v62  ;;  %1891 = vmatprep.subr.bf16.mxu1 %v2355_v26 }
 0x34f   :  { %v2045_v41 = vpop.eup %2044  ;;  %v1308_v6 = vsub.f32 %v1276_v28, %v1292_v31 }
 0x350   :  { %v1386_v16 = vmul.f32 %v2045_v41, %v1338_v34  ;;  %v1229_v44 = vpop.xlane.xlu1 %1228 }
 0x351   :  { %v1324_v40 = vmax.f32 %v1308_v6, 0.0  ;;  %v1275_v49 = vmul.f32 0.03125, %v1229_v44  ;;  %v1250_v44 = vpop.xlane.xlu0 %1249 }
 0x352   :  { %v1409_v61 = vmul.f32 %v2880_v36, %v1386_v16 }
 0x353   :  { %v2047_v27 = vpop.eup %2046  ;;  %v1356_v37 = vadd.f32 1e-05, %v1324_v40  ;;  %v1307_v54 = vsub.f32 %v1275_v49, %v1291_v45 }
 0x354   :  { %v1385_v2 = vmul.f32 %v2047_v27, %v1337_v23  ;;  %v1174_v52 = vpop.xlane.xlu1 %1173  ;;  %v1432_v24 = vadd.f32 %v2884_v58, %v1409_v61  ;;  %v1266_v23 = vmul.f32 0.03125, %v1186_v55  ;;  %v1282_v27 = vmul.f32 0.03125, %v1250_v44 }
 0x355   :  { %2048 = vrsqrt.f32 %v1356_v37  ;;  %v1323_v48 = vmax.f32 %v1307_v54, 0.0  ;;  %v1262_v9 = vmul.f32 0.03125, %v1174_v52 }
 0x356   :  { %v1408_v13 = vmul.f32 %v2880_v36, %v1385_v2  ;;  %v1298_v54 = vmul.f32 %v1266_v23, %v1266_v23 }
 0x357   :  { %v1355_v56 = vadd.f32 1e-05, %v1323_v48  ;;  %v1294_v10 = vmul.f32 %v1262_v9, %v1262_v9  ;;  %v1342_v48 = vsub.f32 %v2839_v3, %v1262_v9 }
 0x358   :  { %v1171_v57 = vpop.xlane.xlu1 %1170  ;;  %v1431_v5 = vadd.f32 %v2884_v58, %v1408_v13 }
 0x359   :  { %2050 = vrsqrt.f32 %v1355_v56  ;;  %v1261_v12 = vmul.f32 0.03125, %v1171_v57  ;;  %v1314_v56 = vsub.f32 %v1282_v27, %v1298_v54 }
 0x35a   :  { %v1892_v19 = vpack.c.bf16 %v1432_v24, %v1431_v5 }
 0x35b   :  { %v1293_v38 = vmul.f32 %v1261_v12, %v1261_v12 }
 0x35c   :  { %v1238_v63 = vpop.xlane.xlu1 %1237  ;;  %1894 = vmatpush3.bf16.xpose.msk.msra.mxu1 %vm2891_vm10, %v1892_v19 }
 0x35d   :  { %v1278_v15 = vmul.f32 0.03125, %v1238_v63  ;;  %1895 = vmatprep.subr.bf16.mxu1 %v2355_v26 }
 0x35f   :  { %v2049_v18 = vpop.eup %2048  ;;  %v1310_v47 = vsub.f32 %v1278_v15, %v1294_v10  ;;  %v1341_v15 = vsub.f32 %v2843_v14, %v1261_v12 }
 0x360   :  { %v1388_v7 = vmul.f32 %v2049_v18, %v1340_v17  ;;  %v1235_v39 = vpop.xlane.xlu1 %1234  ;;  %v1330_v18 = vmax.f32 %v1314_v56, 0.0 }
 0x361   :  { %v1326_v60 = vmax.f32 %v1310_v47, 0.0  ;;  %v1277_v8 = vmul.f32 0.03125, %v1235_v39 }
 0x362   :  { %v1411_v6 = vmul.f32 %v2880_v36, %v1388_v7  ;;  %v1362_v55 = vadd.f32 1e-05, %v1330_v18 }
 0x363   :  { %v2051_v62 = vpop.eup %2050  ;;  %v1358_v31 = vadd.f32 1e-05, %v1326_v60  ;;  %v1309_v28 = vsub.f32 %v1277_v8, %v1293_v38 }
 0x364   :  { %v1387_v34 = vmul.f32 %v2051_v62, %v1339_v22  ;;  %v1180_v41 = vpop.xlane.xlu1 %1179  ;;  %v1434_v49 = vadd.f32 %v2884_v58, %v1411_v6 }
 0x365   :  { %2052 = vrsqrt.f32 %v1358_v31  ;;  %v1325_v16 = vmax.f32 %v1309_v28, 0.0  ;;  %v1264_v51 = vmul.f32 0.03125, %v1180_v41 }
 0x366   :  { %v1410_v53 = vmul.f32 %v2880_v36, %v1387_v34 }
 0x367   :  { %v1357_v30 = vadd.f32 1e-05, %v1325_v16  ;;  %v1296_v2 = vmul.f32 %v1264_v51, %v1264_v51  ;;  %v1344_v16 = vsub.f32 %v2855_v25, %v1264_v51 }
 0x368   :  { %v1177_v45 = vpop.xlane.xlu1 %1176  ;;  %v1433_v40 = vadd.f32 %v2884_v58, %v1410_v53 }
 0x369   :  { %2054 = vrsqrt.f32 %v1357_v30  ;;  %v1263_v52 = vmul.f32 0.03125, %v1177_v45 }
 0x36a   :  { %v1896_v32 = vpack.c.bf16 %v1434_v49, %v1433_v40 }
 0x36b   :  { %v1295_v19 = vmul.f32 %v1263_v52, %v1263_v52  ;;  %v1343_v45 = vsub.f32 %v2859_v1, %v1263_v52 }
 0x36c   :  { %v1244_v37 = vpop.xlane.xlu1 %1243  ;;  %1898 = vmatpush3.bf16.xpose.msk.msra.mxu1 %vm2891_vm10, %v1896_v32 }
 0x36d   :  { %v1280_v61 = vmul.f32 0.03125, %v1244_v37  ;;  %1899 = vmatprep.subr.bf16.mxu1 %v2355_v26  ;;  %v1346_v37 = vsub.f32 %v2813_v33, %v1266_v23 }
 0x36f   :  { %v2053_v13 = vpop.eup %2052  ;;  %v1312_v57 = vsub.f32 %v1280_v61, %v1296_v2 }
 0x370   :  { %v1390_v5 = vmul.f32 %v2053_v13, %v1342_v48  ;;  %v1241_v24 = vpop.xlane.xlu1 %1240 }
 0x371   :  { %v1328_v63 = vmax.f32 %v1312_v57, 0.0  ;;  %v1279_v10 = vmul.f32 0.03125, %v1241_v24 }
 0x372   :  { %v1413_v60 = vmul.f32 %v2880_v36, %v1390_v5  ;;  %v1569_v5 = vrot.slane %v2636_v20, 7 }
 0x373   :  { %v2055_v17 = vpop.eup %2054  ;;  %v1360_v47 = vadd.f32 1e-05, %v1328_v63  ;;  %v1311_v7 = vsub.f32 %v1279_v10, %v1295_v19  ;;  %v1577_v19 = vrot.slane %v2582_v42, 1 }
 0x374   :  { %v1389_v39 = vmul.f32 %v2055_v17, %v1341_v15  ;;  %v1183_v38 = vpop.xlane.xlu1 %1182  ;;  %v1436_v14 = vadd.f32 %v2884_v58, %v1413_v60 }
 0x375   :  { %2056 = vrsqrt.f32 %v1360_v47  ;;  %v1327_v3 = vmax.f32 %v1311_v7, 0.0  ;;  %v1265_v9 = vmul.f32 0.03125, %v1183_v38 }
 0x376   :  { %v1412_v8 = vmul.f32 %v2880_v36, %v1389_v39 }
 0x377   :  { %v1359_v22 = vadd.f32 1e-05, %v1327_v3  ;;  %v1297_v12 = vmul.f32 %v1265_v9, %v1265_v9  ;;  %v1345_v51 = vsub.f32 %v2871_v29, %v1265_v9  ;;  %v1441_v29 = vld [vmem:[#allocation19] sm:$0x7] }
 0x378   :  { %v1247_v62 = vpop.xlane.xlu1 %1246  ;;  %v1435_v31 = vadd.f32 %v2884_v58, %v1412_v8 }
 0x379   :  { %2058 = vrsqrt.f32 %v1359_v22  ;;  %v1281_v28 = vmul.f32 0.03125, %v1247_v62 }
 0x37a   :  { %v1900_v34 = vpack.c.bf16 %v1436_v14, %v1435_v31  ;;  %2060 = vrsqrt.f32 %v1362_v55 }
 0x37b   :  { %v1313_v41 = vsub.f32 %v1281_v28, %v1297_v12 }
 0x37c   :  { %1902 = vmatpush3.bf16.xpose.msk.msra.mxu1 %vm2891_vm10, %v1900_v34 }
 0x37d   :  { %v1329_v6 = vmax.f32 %v1313_v41, 0.0  ;;  %1903 = vmatprep.subr.bf16.mxu1 %v2355_v26 }
 0x37f   :  { %v2057_v53 = vpop.eup %2056  ;;  %v1361_v30 = vadd.f32 1e-05, %v1329_v6 }
 0x380   :  { %v1392_v44 = vmul.f32 %v2057_v53, %v1344_v16 }
 0x381   :  { %2062 = vrsqrt.f32 %v1361_v30 }
 0x382   :  { %v1415_v32 = vmul.f32 %v2880_v36, %v1392_v44 }
 0x383   :  { %v2059_v40 = vpop.eup %2058 }
 0x384   :  { %v1391_v49 = vmul.f32 %v2059_v40, %v1343_v45  ;;  %v2061_v27 = vpop.eup %2060  ;;  %v1438_v25 = vadd.f32 %v2884_v58, %v1415_v32 }
 0x385   :  { %v1394_v2 = vmul.f32 %v2061_v27, %v1346_v37 }
 0x386   :  { %v1414_v54 = vmul.f32 %v2880_v36, %v1391_v49 }
 0x387   :  { %v1417_v1 = vmul.f32 %v2880_v36, %v1394_v2 }
 0x388   :  { %v1437_v61 = vadd.f32 %v2884_v58, %v1414_v54 }
 0x389   :  { %v1440_v52 = vadd.f32 %v2884_v58, %v1417_v1 }
 0x38a   :  { %v1904_v48 = vpack.c.bf16 %v1438_v25, %v1437_v61 }
 0x38b   :  { %v2063_v13 = vpop.eup %2062 }
 0x38c   :  { %v1393_v56 = vmul.f32 %v2063_v13, %v1345_v51  ;;  %1906 = vmatpush3.bf16.xpose.msk.msra.mxu1 %vm2891_vm10, %v1904_v48 }
 0x38d   :  { %1907 = vmatprep.subr.bf16.mxu1 %v2355_v26  ;;  %v1591_v26 = vrot.slane %v2585_v43, 2 }
 0x38e   :  { %v1416_v33 = vmul.f32 %v2880_v36, %v1393_v56 }
 0x390   :  { %v1439_v23 = vadd.f32 %v2884_v58, %v1416_v33 }
 0x392   :  { %v1908_v57 = vpack.c.bf16 %v1440_v52, %v1439_v23 }
 0x394   :  { %1910 = vmatpush3.bf16.xpose.msk.msra.mxu1 %vm2891_vm10, %v1908_v57 }
 0x39b   :  { %1877 = vmatmul.mubr.msk.f32.vlgmr.msra.gmra.mrb[16].mxu1 %vm466_vm0, %v1441_v29 }
 0x46e   :  { %v1559_v24 = vpop.f32.mrb[16].mxu1 }
 0x46f   :  { %v1878_v63 = vpop.f32.mrb[17].mxu1  ;;  %v1564_v36 = vmul.f32 %v1559_v24, %v2602_v50  ;;  %v1580_v10 = vmul.f32 %v1559_v24, %v2623_v11  ;;  %v1585_v58 = vmul.f32 %v1559_v24, %v2638_v21  ;;  %v1594_v0 = vmul.f32 %v1559_v24, %v238_v4 }
 0x470   :  { %v1563_v15 = vmul.f32 %v1559_v24, %v2590_v46  ;;  %v1571_v18 = vmul.f32 %v1569_v5, %v1559_v24  ;;  %v1599_v20 = vmul.f32 %v1559_v24, %v2644_v35  ;;  %v1579_v47 = vmul.f32 %v1577_v19, %v1559_v24 }
 0x471   :  { %v1566_v17 = vrot.slane %v1564_v36, 1  ;;  %v1582_v42 = vrot.slane %v1580_v10, 1  ;;  %v1593_v7 = vmul.f32 %v1591_v26, %v1559_v24  ;;  %v1596_v43 = vrot.slane %v1594_v0, 1 }
 0x472   :  { %v1587_v39 = vrot.slane %v1585_v58, 2  ;;  %v1601_v11 = vrot.slane %v1599_v20, 2  ;;  %v1573_v3 = vrot.slane %v1571_v18, 2 }
 0x473   :  { %v1568_v38 = vadd.f32 %v1566_v17, %v1563_v15  ;;  %v1584_v50 = vadd.f32 %v1582_v42, %v1579_v47  ;;  %v1598_v60 = vadd.f32 %v1596_v43, %v1593_v7 }
 0x475   :  { %v1589_v21 = vadd.f32 %v1587_v39, %v1584_v50  ;;  %v1603_v9 = vadd.f32 %v1601_v11, %v1598_v60  ;;  %v1575_v59 = vadd.f32 %v1573_v3, %v1568_v38 }
 0x477   :  { %v1605_v4 = vrot.slane %v1589_v21, 7  ;;  %v1608_v8 = vrot.slane %v1603_v9, 6 }
 0x479   :  { %v1610_v46 = vsel %vm360_vm1, %v1575_v59, %v1605_v4 }
 0x47a   :  { %v1611_v35 = vsel %vm362_vm2, %v1610_v46, %v1608_v8 }
 0x47b   :  { %v1723_v55 = vclamps-f32 %v1611_v35, 1000.0 }
 0x47d   :  { %1614 = vst [vmem:[#allocation20] sm:$0x7] %v1723_v55 }
 0x47e   :  { %2317 = shalt.err (!%p2314_p8)
}
 0x47f   :  { %s2318_s22 = scalar_lea.hbm %s2996_s11, 64 }
 0x480   :  { %p2319_p9 = scmp.ne.s32.totalorder %s2996_s11, %s2318_s22  ;;  %p2322_p10 = scmp.lt.u32.totalorder %s2318_s22, %s2996_s11 }
 0x482   :  { %p2324_p11 = pnand %p2322_p10, %p2319_p9 }
 0x484   :  { %2327 = shalt.err (!%p2324_p11)
}
 0x485   :  { %1624 = dma.vmem_to_hbm [thread:$0]  %s1622_s7, 64, %s2996_s11, [#allocation4]  }
 0x486   :  { %2340 = dma.done.wait [#allocation4], 64  }
 0x487   :  { %2341 = vsyncadd [#allocation4], 4294967232 }
 0x488   :  { %1628 = vsyncpa [#allocation3], 1 }
 0x489   :  { %1629 = vsyncpa [#allocation6], 1 }
 0x48a   :  { %1630 = vsyncpa [#allocation9], 1 }
 0x48b   :  { %1631 = vsyncpa [#allocation12], 1 }
 0x48c   :  { %1632 = vsyncpa [#allocation15], 1 }
 0x48d   :  { %1633 = vsyncpa [#allocation18], 1 }
 0x48e   :  { %1634 = vsyncpa [#allocation4], 1 }

</bundles_post_ra>
